<compile_context>
chip_gen: v5e
topology: v5e:2x2
jax: 0.10.0
libtpu: 0.0.40
codegen_flags: <defaults>
</compile_context>

<pallas_src>
import jax
import jax.numpy as jnp
from jax.experimental import pallas as pl
from jax.experimental.pallas import tpu as pltpu

Z_DIM = 20
HIDDEN_DIM = 500
OUT_DIM = 784          # 28*28 MNIST

HIDDEN_PAD = 512       # 4 * 128  (lane-aligned hidden)
OUT_PAD = 896          # 7 * 128  (lane-aligned W2 columns for the MXU)
MAX_TILE_B = 512       # batch tile upper bound per grid step


def _round_up(x, m):
    return ((x + m - 1) // m) * m


def decoder_kernel(z_ref, w1_ref, b1_ref, w2_ref, b2_ref, out_ref):
    """One batch tile of the decoder forward, fully VMEM-resident.

    z_ref  : [TILE_B, Z_DIM]          f32
    w1_ref : [Z_DIM, HIDDEN_PAD]      bf16
    b1_ref : [1, HIDDEN_PAD]          f32
    w2_ref : [HIDDEN_PAD, OUT_PAD]    bf16
    b2_ref : [1, OUT_PAD]             f32
    out_ref: [TILE_B, OUT_DIM]        f32   (unpadded output columns)
    """
    z = z_ref[...].astype(jnp.bfloat16)
    # linear1 (bf16 MXU matmul, f32 accumulate) + bias + ReLU in f32
    h = jnp.dot(z, w1_ref[...], preferred_element_type=jnp.float32) + b1_ref[...]
    h = jnp.maximum(h, 0.0)
    # linear2 (lane-aligned 896-wide MXU matmul) + bias
    logits = (
        jnp.dot(h.astype(jnp.bfloat16), w2_ref[...],
                preferred_element_type=jnp.float32)
        + b2_ref[...]
    )
    # drop the padded columns in-register, sigmoid on the EUP via tanh
    logits = logits[:, :OUT_DIM]
    out_ref[...] = (0.5 * (jnp.tanh(0.5 * logits) + 1.0)).astype(out_ref.dtype)


def prepare_params(w1, b1, w2, b2):
    """Pad to lane-aligned shapes and cast weights to bf16.

    Inputs follow the pre-transposed [in, out] convention:
      w1: [Z_DIM, HIDDEN_DIM], b1: [HIDDEN_DIM]
      w2: [HIDDEN_DIM, OUT_DIM], b2: [OUT_DIM]
    """
    w1p = jnp.zeros((Z_DIM, HIDDEN_PAD), jnp.bfloat16)
    w1p = w1p.at[:, :HIDDEN_DIM].set(w1.astype(jnp.bfloat16))
    b1p = jnp.zeros((1, HIDDEN_PAD), jnp.float32)
    b1p = b1p.at[0, :HIDDEN_DIM].set(b1.astype(jnp.float32))

    w2p = jnp.zeros((HIDDEN_PAD, OUT_PAD), jnp.bfloat16)
    w2p = w2p.at[:HIDDEN_DIM, :OUT_DIM].set(w2.astype(jnp.bfloat16))
    b2p = jnp.zeros((1, OUT_PAD), jnp.float32)
    b2p = b2p.at[0, :OUT_DIM].set(b2.astype(jnp.float32))
    return w1p, b1p, w2p, b2p


def decoder_forward(z, w1p, b1p, w2p, b2p):
    """z: [B, Z_DIM] f32 -> mean: [B, OUT_DIM] f32 (padded params from prepare_params)."""
    B = z.shape[0]
    # Adaptive batch tile:
    #  - capped at 512 (amortizes per-grid-step overhead, still small in VMEM),
    #  - at least 2 tiles when B allows it, so v7x megacore gets both cores busy,
    #  - multiple of 8 (sublane alignment).
    tile_b = min(MAX_TILE_B, _round_up(pl.cdiv(B, 2), 8))
    n_tiles = pl.cdiv(B, tile_b)
    B_pad = n_tiles * tile_b
    if B_pad != B:
        z = jnp.pad(z, ((0, B_pad - B), (0, 0)))

    weight_bytes = (w1p.size * 2 + w2p.size * 2 + b1p.size * 4 + b2p.size * 4)
    cost = pl.CostEstimate(
        flops=2 * B_pad * (Z_DIM * HIDDEN_PAD + HIDDEN_PAD * OUT_PAD),
        transcendentals=B_pad * OUT_DIM,
        bytes_accessed=weight_bytes + B_pad * (Z_DIM + OUT_DIM) * 4,
    )

    grid_spec = pltpu.PrefetchScalarGridSpec(
        num_scalar_prefetch=0,
        grid=(n_tiles,),
        in_specs=[
            pl.BlockSpec((tile_b, Z_DIM), lambda i: (i, 0)),        # z tile
            pl.BlockSpec((Z_DIM, HIDDEN_PAD), lambda i: (0, 0)),    # W1 (resident)
            pl.BlockSpec((1, HIDDEN_PAD), lambda i: (0, 0)),        # b1 (resident)
            pl.BlockSpec((HIDDEN_PAD, OUT_PAD), lambda i: (0, 0)),  # W2 (resident)
            pl.BlockSpec((1, OUT_PAD), lambda i: (0, 0)),           # b2 (resident)
        ],
        # 784 == full last dim of the output array -> legal block shape; the
        # last 16-lane column group uses a masked store, which is negligible
        # next to the saved 112-column writeback + post-kernel slice copy.
        out_specs=pl.BlockSpec((tile_b, OUT_DIM), lambda i: (i, 0)),
    )

    out = pl.pallas_call(
        decoder_kernel,
        out_shape=jax.ShapeDtypeStruct((B_pad, OUT_DIM), jnp.float32),
        grid_spec=grid_spec,
        compiler_params=pltpu.CompilerParams(
            dimension_semantics=("parallel",),
            vmem_limit_bytes=32 * 1024 * 1024,
        ),
        cost_estimate=cost,
    )(z, w1p, b1p, w2p, b2p)

    # Only batch-row padding (if any) remains to drop.
    if B_pad != B:
        out = out[:B]
    return out


decoder_forward_jit = jax.jit(decoder_forward)


def init_params(key):
    """Deterministic init matching nn.Linear's U(-1/sqrt(fan_in), 1/sqrt(fan_in))."""
    k1, k2, k3, k4 = jax.random.split(key, 4)
    lim1 = 1.0 / jnp.sqrt(Z_DIM)
    lim2 = 1.0 / jnp.sqrt(HIDDEN_DIM)
    # stored pre-transposed: [in, out]
    w1 = jax.random.uniform(k1, (Z_DIM, HIDDEN_DIM), jnp.float32, -lim1, lim1)
    b1 = jax.random.uniform(k2, (HIDDEN_DIM,), jnp.float32, -lim1, lim1)
    w2 = jax.random.uniform(k3, (HIDDEN_DIM, OUT_DIM), jnp.float32, -lim2, lim2)
    b2 = jax.random.uniform(k4, (OUT_DIM,), jnp.float32, -lim2, lim2)
    return w1, b1, w2, b2


def decoder_reference_bf16(z, w1, b1, w2, b2):
    """Reference with the same bf16 weight quantization the kernel uses."""
    zb = z.astype(jnp.bfloat16)
    h = jnp.dot(zb, w1.astype(jnp.bfloat16),
                preferred_element_type=jnp.float32) + b1
    h = jnp.maximum(h, 0.0)
    logits = jnp.dot(h.astype(jnp.bfloat16), w2.astype(jnp.bfloat16),
                     preferred_element_type=jnp.float32) + b2
    return jax.nn.sigmoid(logits)


def decoder_reference_f32(z, w1, b1, w2, b2):
    h = jnp.maximum(z @ w1 + b1, 0.0)
    return jax.nn.sigmoid(h @ w2 + b2)


if __name__ == "__main__":
    key = jax.random.PRNGKey(0)
    kp, kz = jax.random.split(key)
    w1, b1, w2, b2 = init_params(kp)
    w1p, b1p, w2p, b2p = prepare_params(w1, b1, w2, b2)

    batch = 8
    z = jax.random.normal(kz, (batch, Z_DIM), jnp.float32)

    mean = decoder_forward_jit(z, w1p, b1p, w2p, b2p)
    mean = jax.block_until_ready(mean)

    assert mean.shape == (batch, OUT_DIM), mean.shape

    ref_bf16 = decoder_reference_bf16(z, w1, b1, w2, b2)
    assert jnp.allclose(mean, ref_bf16, atol=2e-3, rtol=2e-3), \
        "mismatch vs bf16 reference"

    ref_f32 = decoder_reference_f32(z, w1, b1, w2, b2)
    assert jnp.allclose(mean, ref_f32, atol=2e-2, rtol=2e-2), \
        "mismatch vs f32 reference"

    # exercise a multi-tile / padded-batch path too (2 tiles -> megacore on v7x)
    z_big = jax.random.normal(kz, (300, Z_DIM), jnp.float32)
    mean_big = jax.block_until_ready(decoder_forward_jit(z_big, w1p, b1p, w2p, b2p))
    assert mean_big.shape == (300, OUT_DIM), mean_big.shape
    ref_big = decoder_reference_f32(z_big, w1, b1, w2, b2)
    assert jnp.allclose(mean_big, ref_big, atol=2e-2, rtol=2e-2), \
        "mismatch vs f32 reference (multi-tile)"

    print("KERNEL_OK")
</pallas_src>

<mosaic_0001>
module attributes {stable_mosaic.version = 11 : i64} {
  func.func @decoder_kernel(%arg0: i32, %arg1: memref<8x20xf32, #tpu.memory_space<vmem>>, %arg2: memref<20x512xbf16, #tpu.memory_space<vmem>>, %arg3: memref<1x512xf32, #tpu.memory_space<vmem>>, %arg4: memref<512x896xbf16, #tpu.memory_space<vmem>>, %arg5: memref<1x896xf32, #tpu.memory_space<vmem>>, %arg6: memref<8x784xf32, #tpu.memory_space<vmem>>) attributes {dimension_semantics = [#tpu.dimension_semantics<parallel>], iteration_bounds = array<i64: 1>, scalar_prefetch = 0 : i64, scratch_operands = 0 : i64, tpu.core_type = #tpu.core_type<tc>, window_params = [{transform_indices = @transform_0, window_bounds = array<i64: 8, 20>}, {pipeline_mode = #tpu.pipeline_mode<synchronous>, transform_indices = @transform_1, window_bounds = array<i64: 20, 512>}, {pipeline_mode = #tpu.pipeline_mode<synchronous>, transform_indices = @transform_2, window_bounds = array<i64: 1, 512>}, {pipeline_mode = #tpu.pipeline_mode<synchronous>, transform_indices = @transform_3, window_bounds = array<i64: 512, 896>}, {pipeline_mode = #tpu.pipeline_mode<synchronous>, transform_indices = @transform_4, window_bounds = array<i64: 1, 896>}, {transform_indices = @transform_5, window_bounds = array<i64: 8, 784>}]} {
    %c0 = arith.constant 0 : index
    %c0_0 = arith.constant 0 : index
    %0 = vector.load %arg1[%c0, %c0_0] : memref<8x20xf32, #tpu.memory_space<vmem>>, vector<8x20xf32>
    %1 = arith.truncf %0 : vector<8x20xf32> to vector<8x20xbf16>
    %c0_1 = arith.constant 0 : index
    %c0_2 = arith.constant 0 : index
    %2 = vector.load %arg2[%c0_1, %c0_2] : memref<20x512xbf16, #tpu.memory_space<vmem>>, vector<20x512xbf16>
    %cst = arith.constant dense<0.000000e+00> : vector<8x512xf32>
    %3 = tpu.matmul %1, %2, %cst {dimension_numbers = #tpu.dot_dimension_numbers<[1], [0], [0], [1], [0, 0, 1, 1], [], []>} : vector<8x20xbf16>, vector<20x512xbf16>, vector<8x512xf32> -> vector<8x512xf32>
    %c0_3 = arith.constant 0 : index
    %c0_4 = arith.constant 0 : index
    %4 = vector.load %arg3[%c0_3, %c0_4] : memref<1x512xf32, #tpu.memory_space<vmem>>, vector<1x512xf32>
    %5 = vector.broadcast %4 : vector<1x512xf32> to vector<8x512xf32>
    %6 = arith.addf %3, %5 : vector<8x512xf32>
    %cst_5 = arith.constant 0.000000e+00 : f32
    %7 = vector.broadcast %cst_5 : f32 to vector<8x512xf32>
    %8 = arith.maximumf %6, %7 : vector<8x512xf32>
    %9 = arith.truncf %8 : vector<8x512xf32> to vector<8x512xbf16>
    %c0_6 = arith.constant 0 : index
    %c0_7 = arith.constant 0 : index
    %10 = vector.load %arg4[%c0_6, %c0_7] : memref<512x896xbf16, #tpu.memory_space<vmem>>, vector<512x896xbf16>
    %cst_8 = arith.constant dense<0.000000e+00> : vector<8x896xf32>
    %11 = tpu.matmul %9, %10, %cst_8 {dimension_numbers = #tpu.dot_dimension_numbers<[1], [0], [0], [1], [0, 0, 1, 1], [], []>} : vector<8x512xbf16>, vector<512x896xbf16>, vector<8x896xf32> -> vector<8x896xf32>
    %c0_9 = arith.constant 0 : index
    %c0_10 = arith.constant 0 : index
    %12 = vector.load %arg5[%c0_9, %c0_10] : memref<1x896xf32, #tpu.memory_space<vmem>>, vector<1x896xf32>
    %13 = vector.broadcast %12 : vector<1x896xf32> to vector<8x896xf32>
    %14 = arith.addf %11, %13 : vector<8x896xf32>
    %15 = vector.extract_strided_slice %14 {offsets = [0, 0], sizes = [8, 784], strides = [1, 1]} : vector<8x896xf32> to vector<8x784xf32>
    %cst_11 = arith.constant 5.000000e-01 : f32
    %16 = vector.broadcast %cst_11 : f32 to vector<8x784xf32>
    %17 = arith.mulf %16, %15 : vector<8x784xf32>
    %18 = math.tanh %17 : vector<8x784xf32>
    %cst_12 = arith.constant 1.000000e+00 : f32
    %19 = vector.broadcast %cst_12 : f32 to vector<8x784xf32>
    %20 = arith.addf %18, %19 : vector<8x784xf32>
    %cst_13 = arith.constant 5.000000e-01 : f32
    %21 = vector.broadcast %cst_13 : f32 to vector<8x784xf32>
    %22 = arith.mulf %21, %20 : vector<8x784xf32>
    %c0_14 = arith.constant 0 : index
    %c0_15 = arith.constant 0 : index
    %23 = vector.load %arg6[%c0_14, %c0_15] : memref<8x784xf32, #tpu.memory_space<vmem>>, vector<8x784xf32>
    tpu.vector_store %arg6[%c0_14, %c0_15], %22 {strides = array<i32>} : memref<8x784xf32, #tpu.memory_space<vmem>>, vector<8x784xf32>,
    return
  }
  func.func @transform_0(%arg0: i32) -> (i32, i32) {
    %c0_i32 = arith.constant 0 : i32
    %c0_i32_0 = arith.constant 0 : i32
    return %arg0, %c0_i32 : i32, i32
  }
  func.func @transform_1(%arg0: i32) -> (i32, i32) {
    %c0_i32 = arith.constant 0 : i32
    %c0_i32_0 = arith.constant 0 : i32
    %c0_i32_1 = arith.constant 0 : i32
    return %c0_i32, %c0_i32_0 : i32, i32
  }
  func.func @transform_2(%arg0: i32) -> (i32, i32) {
    %c0_i32 = arith.constant 0 : i32
    %c0_i32_0 = arith.constant 0 : i32
    %c0_i32_1 = arith.constant 0 : i32
    return %c0_i32, %c0_i32_0 : i32, i32
  }
  func.func @transform_3(%arg0: i32) -> (i32, i32) {
    %c0_i32 = arith.constant 0 : i32
    %c0_i32_0 = arith.constant 0 : i32
    %c0_i32_1 = arith.constant 0 : i32
    return %c0_i32, %c0_i32_0 : i32, i32
  }
  func.func @transform_4(%arg0: i32) -> (i32, i32) {
    %c0_i32 = arith.constant 0 : i32
    %c0_i32_0 = arith.constant 0 : i32
    %c0_i32_1 = arith.constant 0 : i32
    return %c0_i32, %c0_i32_0 : i32, i32
  }
  func.func @transform_5(%arg0: i32) -> (i32, i32) {
    %c0_i32 = arith.constant 0 : i32
    %c0_i32_0 = arith.constant 0 : i32
    return %arg0, %c0_i32 : i32, i32
  }
}

</mosaic_0001>

<bundles_post_ra>
// kernel: decoder_forward.1
= control target key start
LH: loop header
LB: loop body
LE: loop exit
PB: predicated region body
PF: predicated region fallthrough
CT: control target
= control target key end

     0   :  { %10 = vsyncpa [#allocation3], 0  ;;  %s3493_s0 = inlined_call_operand.hbm [shape: f32[8,20], index: 0, kind: input, shape index: {}]   ;;  %s3494_s1 = inlined_call_operand.hbm [shape: bf16[20,512], index: 1, kind: input, shape index: {}]   ;;  %s3495_s2 = inlined_call_operand.hbm [shape: f32[1,512], index: 2, kind: input, shape index: {}]   ;;  %s3496_s3 = inlined_call_operand.hbm [shape: bf16[512,896], index: 3, kind: input, shape index: {}]   ;;  %s3497_s4 = inlined_call_operand.hbm [shape: f32[1,896], index: 4, kind: input, shape index: {}]   ;;  %s3498_s5 = inlined_call_operand.hbm [shape: f32[8,784], index: 5, kind: output, shape index: {}]  }
   0x1   :  { %11 = vsyncpa [#allocation6], 0 }
   0x2   :  { %12 = vsyncpa [#allocation9], 0  ;;  %s29_s20 = sshll.u32 %s3494_s1, 4  ;;  %s30_s20 = int_to_ptr.hbm [resolvable:$true] %s29_s20 }
   0x3   :  { %13 = vsyncpa [#allocation4], 0  ;;  %s3382_s21 = smov [#allocation5]   ;;  %s53_s25 = sshll.u32 %s3496_s3, 4  ;;  %s54_s25 = int_to_ptr.hbm [resolvable:$true] %s53_s25 }
   0x4   :  { %s31_s22 = sshll.u32 %s3382_s21, 4  ;;  %s3383_s26 = smov 256   ;;  %s32_s22 = int_to_ptr.vmem [resolvable:$true] %s31_s22 }
   0x5   :  { %s3384_s27 = smov 16   ;;  %s3385_s28 = smov [#allocation8]  }
   0x6   :  { %37 = dma.hbm_to_vmem [thread:$0]  %s30_s20, 768, %s32_s22, [#allocation6], %s3383_s26, %s3383_s26, %s3384_s27  }
   0x7   :  { %s55_s29 = sshll.u32 %s3385_s28, 4  ;;  %s3386_s30 = smov 448   ;;  %s56_s29 = int_to_ptr.vmem [resolvable:$true] %s55_s29 }
   0x8   :  { %s3387_s6 = smov 28   ;;  %s19_s8 = sshll.u32 %s3493_s0, 4  ;;  %s20_s8 = int_to_ptr.hbm [resolvable:$true] %s19_s8 }
   0x9   :  { %61 = dma.hbm_to_vmem [thread:$0]  %s54_s25, 28672, %s56_s29, [#allocation9], %s3386_s30, %s3386_s30, %s3387_s6  }
   0xa   :  { %s3388_s9 = smov [#allocation2]   ;;  %s43_s12 = sshll.u32 %s3495_s2, 4  ;;  %s44_s12 = int_to_ptr.hbm [resolvable:$true] %s43_s12 }
   0xb   :  { %s21_s10 = sshll.u32 %s3388_s9, 4  ;;  %s3389_s13 = smov [#allocation7]   ;;  %s22_s10 = int_to_ptr.vmem [resolvable:$true] %s21_s10 }
   0xc   :  { %24 = dma.hbm_to_vmem [thread:$0]  %s20_s8, 128, %s22_s10, [#allocation3]  }
   0xd   :  { %s45_s14 = sshll.u32 %s3389_s13, 4  ;;  %s67_s17 = sshll.u32 %s3497_s4, 4  ;;  %s46_s14 = int_to_ptr.vmem [resolvable:$true] %s45_s14  ;;  %s68_s17 = int_to_ptr.hbm [resolvable:$true] %s67_s17 }
   0xe   :  { %48 = dma.hbm_to_vmem [thread:$0]  %s44_s12, 64, %s46_s14, [#allocation6]  }
   0xf   :  { %s3390_s0 = smov [#allocation10]  }
  0x10   :  { %s69_s18 = sshll.u32 %s3390_s0, 4  ;;  %s70_s18 = int_to_ptr.vmem [resolvable:$true] %s69_s18 }
  0x11   :  { %72 = dma.hbm_to_vmem [thread:$0]  %s68_s17, 112, %s70_s18, [#allocation9]  }
  0x12   :  { %3374 = dma.done.wait [#allocation3], 128  }
  0x13   :  { %3375 = vsyncadd [#allocation3], 4294967168 }
  0x14   :  { %3376 = dma.done.wait [#allocation6], 832  }
  0x15   :  { %3377 = vsyncadd [#allocation6], 4294966464 }
  0x16   :  { %3378 = dma.done.wait [#allocation9], 28784  }
  0x17   :  { %3379 = vsyncadd [#allocation9], 4294938512  ;;  %v100_v0 = vld [vmem:[#allocation5 + $0x20] sm:$0x33]  ;;  %vm146_vm0 = vcmask 1041408   ;;  %v94_v28 = vld [vmem:[#allocation2] sm:$0xff] }
  0x18   :  { %v101_v1 = vld [vmem:[#allocation5 + $0x28] sm:$0x33]  ;;  %v126_v2 = vunpack.c.l.b16 %v100_v0  ;;  %v127_v3 = vunpack.c.h.b16 %v100_v0  ;;  %v2064_v6 = vld [vmem:[#allocation5] sm:$0xf]  ;;  %v2980_v7 = vld [vmem:[#allocation5 + $0xc] sm:$0xf0]  ;;  %v95_v38 = vpack.c.bf16 %v94_v28, %v94_v28 }
  0x19   :  { %v128_v4 = vunpack.c.l.b16 %v101_v1  ;;  %v129_v5 = vunpack.c.h.b16 %v101_v1  ;;  %v2978_v8 = vld [vmem:[#allocation5 + $0x4] sm:$0xf]  ;;  %v2066_v9 = vld [vmem:[#allocation5 + $0x10] sm:$0xf0]  ;;  %v2072_v10 = vld [vmem:[#allocation5 + $0x8] sm:$0xf]  ;;  %v2065_v26 = vor.u32 %v2980_v7, %v2064_v6 }
  0x1a   :  { %v134_v11 = vpack.c.b16 %v126_v2, %v126_v2  ;;  %v135_v12 = vpack.c.b16 %v127_v3, %v127_v3  ;;  %v2981_v15 = vld [vmem:[#allocation5 + $0x14] sm:$0xf0]  ;;  %v2979_v16 = vld [vmem:[#allocation5 + $0xc] sm:$0xf]  ;;  %v2074_v17 = vld [vmem:[#allocation5 + $0x18] sm:$0xf0]  ;;  %v2069_v27 = vor.u32 %v2978_v8, %v2066_v9 }
  0x1b   :  { %v136_v13 = vpack.c.b16 %v128_v4, %v128_v4  ;;  %v137_v14 = vpack.c.b16 %v129_v5, %v129_v5  ;;  %v2280_v18 = vld [vmem:[#allocation8 + $0x188] sm:$0xf]  ;;  %v3034_v19 = vld [vmem:[#allocation8 + $0x1a0] sm:$0xf0]  ;;  %v2073_v29 = vor.u32 %v2981_v15, %v2072_v10  ;;  %v2077_v30 = vor.u32 %v2979_v16, %v2074_v17  ;;  %v2252_v31 = vld [vmem:[#allocation8 + $0x150] sm:$0xf] }
  0x1c   :  { %v2504_v20 = vld [vmem:[#allocation8 + $0x348] sm:$0xf]  ;;  %v148_v21 = vsel %vm146_vm0, %v134_v11, 0  ;;  %v151_v22 = vsel %vm146_vm0, %v135_v12, 0  ;;  %v3090_v25 = vld [vmem:[#allocation8 + $0x360] sm:$0xf0]  ;;  %v2281_v33 = vor.u32 %v3034_v19, %v2280_v18 }
  0x1d   :  { %v154_v23 = vsel %vm146_vm0, %v136_v13, 0  ;;  %v157_v24 = vsel %vm146_vm0, %v137_v14, 0  ;;  %165 = vmatpush.bf16.msra.mxu0 %v148_v21  ;;  %178 = vmatpush.bf16.msra.mxu1 %v151_v22  ;;  %v2728_v32 = vld [vmem:[#allocation8 + $0x508] sm:$0xf]  ;;  %v2505_v34 = vor.u32 %v3090_v25, %v2504_v20  ;;  %v3146_v35 = vld [vmem:[#allocation8 + $0x520] sm:$0xf0] }
  0x1e   :  { %191 = vmatpush.bf16.msra.mxu2 %v154_v23  ;;  %204 = vmatpush.bf16.msra.mxu3 %v157_v24  ;;  %v2952_v36 = vld [vmem:[#allocation8 + $0x6c8] sm:$0xf]  ;;  %v3202_v37 = vld [vmem:[#allocation8 + $0x6e0] sm:$0xf0]  ;;  %v3027_v39 = vld [vmem:[#allocation8 + $0x168] sm:$0xf0]  ;;  %v2729_v42 = vor.u32 %v3146_v35, %v2728_v32 }
  0x1f   :  { %v2476_v40 = vld [vmem:[#allocation8 + $0x310] sm:$0xf]  ;;  %v3083_v41 = vld [vmem:[#allocation8 + $0x328] sm:$0xf0]  ;;  %vm142_vm1 = vcmask 162816   ;;  %v2953_v43 = vor.u32 %v3202_v37, %v2952_v36  ;;  %v2253_v46 = vor.u32 %v3027_v39, %v2252_v31  ;;  %s3391_s2 = smov [#allocation11]  }
  0x20   :  { %v2224_v44 = vld [vmem:[#allocation8 + $0x118] sm:$0xf]  ;;  %v2700_v45 = vld [vmem:[#allocation8 + $0x4d0] sm:$0xf]  ;;  %v2477_v47 = vor.u32 %v3083_v41, %v2476_v40  ;;  %v3139_v48 = vld [vmem:[#allocation8 + $0x4e8] sm:$0xf0] }
  0x21   :  { %166 = vmatpush.bf16.msra.mxu0 %v2065_v26  ;;  %179 = vmatpush.bf16.msra.mxu1 %v2069_v27  ;;  %v2924_v49 = vld [vmem:[#allocation8 + $0x690] sm:$0xf]  ;;  %v3195_v50 = vld [vmem:[#allocation8 + $0x6a8] sm:$0xf0]  ;;  %v3020_v51 = vld [vmem:[#allocation8 + $0x130] sm:$0xf0]  ;;  %v2701_v54 = vor.u32 %v3139_v48, %v2700_v45 }
  0x22   :  { %192 = vmatpush.bf16.msra.mxu2 %v2073_v29  ;;  %205 = vmatpush.bf16.msra.mxu3 %v2077_v30  ;;  %v2448_v52 = vld [vmem:[#allocation8 + $0x2d8] sm:$0xf]  ;;  %v3076_v53 = vld [vmem:[#allocation8 + $0x2f0] sm:$0xf0]  ;;  %v2925_v55 = vor.u32 %v3195_v50, %v2924_v49  ;;  %v2196_v56 = vld [vmem:[#allocation8 + $0xe0] sm:$0xf]  ;;  %v2225_v58 = vor.u32 %v3020_v51, %v2224_v44 }
  0x23   :  { %v2672_v57 = vld [vmem:[#allocation8 + $0x498] sm:$0xf]  ;;  %v2449_v59 = vor.u32 %v3076_v53, %v2448_v52  ;;  %v3132_v60 = vld [vmem:[#allocation8 + $0x4b0] sm:$0xf0]  ;;  %v3013_v63 = vld [vmem:[#allocation8 + $0xf8] sm:$0xf0] }
  0x24   :  { %2078 = vmatmul.msk.bf16.vlgmr.msra.gmra.mxu0 %vm142_vm1, %v95_v38  ;;  %2079 = vmatmul.msk.bf16.vlgmr.msra.gmra.mxu1 %vm142_vm1, %v95_v38  ;;  %v2896_v61 = vld [vmem:[#allocation8 + $0x658] sm:$0xf]  ;;  %v3188_v62 = vld [vmem:[#allocation8 + $0x670] sm:$0xf0]  ;;  %v2420_v0 = vld [vmem:[#allocation8 + $0x2a0] sm:$0xf]  ;;  %v2673_v2 = vor.u32 %v3132_v60, %v2672_v57  ;;  %v2197_v6 = vor.u32 %v3013_v63, %v2196_v56 }
  0x25   :  { %1643 = vmatpush.bf16.msrb.mxu0 %v2281_v33  ;;  %1656 = vmatpush.bf16.msrb.mxu1 %v2505_v34  ;;  %v3069_v1 = vld [vmem:[#allocation8 + $0x2b8] sm:$0xf0]  ;;  %v2897_v3 = vor.u32 %v3188_v62, %v2896_v61  ;;  %v2168_v4 = vld [vmem:[#allocation8 + $0xa8] sm:$0xf]  ;;  %v2644_v5 = vld [vmem:[#allocation8 + $0x460] sm:$0xf] }
  0x26   :  { %2080 = vmatmul.msk.bf16.vlgmr.msra.gmra.mxu2 %vm142_vm1, %v95_v38  ;;  %2081 = vmatmul.msk.bf16.vlgmr.msra.gmra.mxu3 %vm142_vm1, %v95_v38  ;;  %v2421_v7 = vor.u32 %v3069_v1, %v2420_v0  ;;  %v3125_v8 = vld [vmem:[#allocation8 + $0x478] sm:$0xf0]  ;;  %v2868_v9 = vld [vmem:[#allocation8 + $0x620] sm:$0xf]  ;;  %v3006_v11 = vld [vmem:[#allocation8 + $0xc0] sm:$0xf0] }
  0x27   :  { %1669 = vmatpush.bf16.msrb.mxu2 %v2729_v42  ;;  %1682 = vmatpush.bf16.msrb.mxu3 %v2953_v43  ;;  %v3181_v10 = vld [vmem:[#allocation8 + $0x638] sm:$0xf0]  ;;  %v2392_v12 = vld [vmem:[#allocation8 + $0x268] sm:$0xf]  ;;  %v3062_v13 = vld [vmem:[#allocation8 + $0x280] sm:$0xf0]  ;;  %v2645_v14 = vor.u32 %v3125_v8, %v2644_v5  ;;  %v2169_v18 = vor.u32 %v3006_v11, %v2168_v4 }
  0x28   :  { %v2869_v15 = vor.u32 %v3181_v10, %v2868_v9  ;;  %v2140_v16 = vld [vmem:[#allocation8 + $0x70] sm:$0xf]  ;;  %v2616_v17 = vld [vmem:[#allocation8 + $0x428] sm:$0xf]  ;;  %v2393_v19 = vor.u32 %v3062_v13, %v2392_v12  ;;  %v3118_v20 = vld [vmem:[#allocation8 + $0x440] sm:$0xf0] }
  0x29   :  { %1644 = vmatpush.bf16.msrb.mxu0 %v2253_v46  ;;  %1657 = vmatpush.bf16.msrb.mxu1 %v2477_v47  ;;  %v2840_v21 = vld [vmem:[#allocation8 + $0x5e8] sm:$0xf]  ;;  %v3174_v22 = vld [vmem:[#allocation8 + $0x600] sm:$0xf0]  ;;  %v2999_v23 = vld [vmem:[#allocation8 + $0x88] sm:$0xf0]  ;;  %v2617_v26 = vor.u32 %v3118_v20, %v2616_v17 }
  0x2a   :  { %v2364_v24 = vld [vmem:[#allocation8 + $0x230] sm:$0xf]  ;;  %v3055_v25 = vld [vmem:[#allocation8 + $0x248] sm:$0xf0]  ;;  %v2841_v27 = vor.u32 %v3174_v22, %v2840_v21  ;;  %v2112_v28 = vld [vmem:[#allocation8 + $0x38] sm:$0xf]  ;;  %v2141_v30 = vor.u32 %v2999_v23, %v2140_v16 }
  0x2b   :  { %1670 = vmatpush.bf16.msrb.mxu2 %v2701_v54  ;;  %1683 = vmatpush.bf16.msrb.mxu3 %v2925_v55  ;;  %v2588_v29 = vld [vmem:[#allocation8 + $0x3f0] sm:$0xf]  ;;  %v2365_v31 = vor.u32 %v3055_v25, %v2364_v24  ;;  %v3111_v32 = vld [vmem:[#allocation8 + $0x408] sm:$0xf0]  ;;  %v2992_v35 = vld [vmem:[#allocation8 + $0x50] sm:$0xf0] }
  0x2c   :  { %v2812_v33 = vld [vmem:[#allocation8 + $0x5b0] sm:$0xf]  ;;  %v3167_v34 = vld [vmem:[#allocation8 + $0x5c8] sm:$0xf0]  ;;  %v2336_v36 = vld [vmem:[#allocation8 + $0x1f8] sm:$0xf]  ;;  %v2589_v38 = vor.u32 %v3111_v32, %v2588_v29  ;;  %v2113_v43 = vor.u32 %v2992_v35, %v2112_v28 }
  0x2d   :  { %1645 = vmatpush.bf16.msrb.mxu0 %v2225_v58  ;;  %1658 = vmatpush.bf16.msrb.mxu1 %v2449_v59  ;;  %v3048_v37 = vld [vmem:[#allocation8 + $0x210] sm:$0xf0]  ;;  %v2813_v39 = vor.u32 %v3167_v34, %v2812_v33  ;;  %v2084_v40 = vld [vmem:[#allocation8] sm:$0xf]  ;;  %v2985_v41 = vld [vmem:[#allocation8 + $0x18] sm:$0xf0] }
  0x2e   :  { %v2560_v42 = vld [vmem:[#allocation8 + $0x3b8] sm:$0xf]  ;;  %v2337_v44 = vor.u32 %v3048_v37, %v2336_v36  ;;  %v3104_v45 = vld [vmem:[#allocation8 + $0x3d0] sm:$0xf0]  ;;  %v2308_v48 = vld [vmem:[#allocation8 + $0x1c0] sm:$0xf]  ;;  %v2085_v58 = vor.u32 %v2985_v41, %v2084_v40 }
  0x2f   :  { %1671 = vmatpush.bf16.msrb.mxu2 %v2673_v2  ;;  %1684 = vmatpush.bf16.msrb.mxu3 %v2897_v3  ;;  %v2784_v46 = vld [vmem:[#allocation8 + $0x578] sm:$0xf]  ;;  %v3160_v47 = vld [vmem:[#allocation8 + $0x590] sm:$0xf0]  ;;  %v3041_v49 = vld [vmem:[#allocation8 + $0x1d8] sm:$0xf0]  ;;  %v2561_v54 = vor.u32 %v3104_v45, %v2560_v42 }
  0x30   :  { %v3031_v50 = vld [vmem:[#allocation8 + $0x18c] sm:$0xf]  ;;  %v2282_v51 = vld [vmem:[#allocation8 + $0x1a4] sm:$0xf0]  ;;  %v2785_v55 = vor.u32 %v3160_v47, %v2784_v46  ;;  %v2532_v56 = vld [vmem:[#allocation8 + $0x380] sm:$0xf]  ;;  %v2309_v59 = vor.u32 %v3041_v49, %v2308_v48 }
  0x31   :  { %1646 = vmatpush.bf16.msrb.mxu0 %v2197_v6  ;;  %1659 = vmatpush.bf16.msrb.mxu1 %v2421_v7  ;;  %v3087_v52 = vld [vmem:[#allocation8 + $0x34c] sm:$0xf]  ;;  %v2506_v53 = vld [vmem:[#allocation8 + $0x364] sm:$0xf0]  ;;  %v3097_v57 = vld [vmem:[#allocation8 + $0x398] sm:$0xf0]  ;;  %v2285_v0 = vor.u32 %v3031_v50, %v2282_v51 }
  0x32   :  { %v3024_v60 = vld [vmem:[#allocation8 + $0x154] sm:$0xf]  ;;  %v2756_v61 = vld [vmem:[#allocation8 + $0x540] sm:$0xf]  ;;  %v3153_v62 = vld [vmem:[#allocation8 + $0x558] sm:$0xf0]  ;;  %v2509_v1 = vor.u32 %v3087_v52, %v2506_v53  ;;  %v2533_v8 = vor.u32 %v3097_v57, %v2532_v56 }
  0x33   :  { %1672 = vmatpush.bf16.msrb.mxu2 %v2645_v14  ;;  %1685 = vmatpush.bf16.msrb.mxu3 %v2869_v15  ;;  %v3143_v63 = vld [vmem:[#allocation8 + $0x50c] sm:$0xf]  ;;  %v2730_v2 = vld [vmem:[#allocation8 + $0x524] sm:$0xf0]  ;;  %v2254_v5 = vld [vmem:[#allocation8 + $0x16c] sm:$0xf0]  ;;  %v2757_v9 = vor.u32 %v3153_v62, %v2756_v61 }
  0x34   :  { %v3199_v3 = vld [vmem:[#allocation8 + $0x6cc] sm:$0xf]  ;;  %v2954_v4 = vld [vmem:[#allocation8 + $0x6e4] sm:$0xf0]  ;;  %v3080_v6 = vld [vmem:[#allocation8 + $0x314] sm:$0xf]  ;;  %v2733_v10 = vor.u32 %v3143_v63, %v2730_v2  ;;  %v2257_v14 = vor.u32 %v3024_v60, %v2254_v5 }
  0x35   :  { %1647 = vmatpush.bf16.msrb.mxu0 %v2169_v18  ;;  %1660 = vmatpush.bf16.msrb.mxu1 %v2393_v19  ;;  %v2478_v7 = vld [vmem:[#allocation8 + $0x32c] sm:$0xf0]  ;;  %v2957_v11 = vor.u32 %v3199_v3, %v2954_v4  ;;  %v3017_v12 = vld [vmem:[#allocation8 + $0x11c] sm:$0xf]  ;;  %v3136_v13 = vld [vmem:[#allocation8 + $0x4d4] sm:$0xf] }
  0x36   :  { %v2481_v15 = vor.u32 %v3080_v6, %v2478_v7  ;;  %v2702_v16 = vld [vmem:[#allocation8 + $0x4ec] sm:$0xf0]  ;;  %v3192_v17 = vld [vmem:[#allocation8 + $0x694] sm:$0xf]  ;;  %v2226_v19 = vld [vmem:[#allocation8 + $0x134] sm:$0xf0] }
  0x37   :  { %1673 = vmatpush.bf16.msrb.mxu2 %v2617_v26  ;;  %1686 = vmatpush.bf16.msrb.mxu3 %v2841_v27  ;;  %v2926_v18 = vld [vmem:[#allocation8 + $0x6ac] sm:$0xf0]  ;;  %v3073_v20 = vld [vmem:[#allocation8 + $0x2dc] sm:$0xf]  ;;  %v2450_v21 = vld [vmem:[#allocation8 + $0x2f4] sm:$0xf0]  ;;  %v2705_v22 = vor.u32 %v3136_v13, %v2702_v16  ;;  %v2229_v26 = vor.u32 %v3017_v12, %v2226_v19 }
  0x38   :  { %v2929_v23 = vor.u32 %v3192_v17, %v2926_v18  ;;  %v3010_v24 = vld [vmem:[#allocation8 + $0xe4] sm:$0xf]  ;;  %v3129_v25 = vld [vmem:[#allocation8 + $0x49c] sm:$0xf]  ;;  %v2453_v27 = vor.u32 %v3073_v20, %v2450_v21  ;;  %v2674_v28 = vld [vmem:[#allocation8 + $0x4b4] sm:$0xf0] }
  0x39   :  { %1648 = vmatpush.bf16.msrb.mxu0 %v2141_v30  ;;  %1661 = vmatpush.bf16.msrb.mxu1 %v2365_v31  ;;  %v3185_v29 = vld [vmem:[#allocation8 + $0x65c] sm:$0xf]  ;;  %v2898_v30 = vld [vmem:[#allocation8 + $0x674] sm:$0xf0]  ;;  %v2198_v31 = vld [vmem:[#allocation8 + $0xfc] sm:$0xf0]  ;;  %v2677_v34 = vor.u32 %v3129_v25, %v2674_v28 }
  0x3a   :  { %v3066_v32 = vld [vmem:[#allocation8 + $0x2a4] sm:$0xf]  ;;  %v2422_v33 = vld [vmem:[#allocation8 + $0x2bc] sm:$0xf0]  ;;  %v2901_v35 = vor.u32 %v3185_v29, %v2898_v30  ;;  %v3003_v36 = vld [vmem:[#allocation8 + $0xac] sm:$0xf] }
  0x3b   :  { %1674 = vmatpush.bf16.msrb.mxu2 %v2589_v38  ;;  %1687 = vmatpush.bf16.msrb.mxu3 %v2813_v39  ;;  %v3122_v37 = vld [vmem:[#allocation8 + $0x464] sm:$0xf]  ;;  %v2201_v38 = vor.u32 %v3010_v24, %v2198_v31  ;;  %v2425_v39 = vor.u32 %v3066_v32, %v2422_v33  ;;  %v2646_v40 = vld [vmem:[#allocation8 + $0x47c] sm:$0xf0]  ;;  %v2394_v45 = vld [vmem:[#allocation8 + $0x284] sm:$0xf0] }
  0x3c   :  { %v3178_v41 = vld [vmem:[#allocation8 + $0x624] sm:$0xf]  ;;  %v2870_v42 = vld [vmem:[#allocation8 + $0x63c] sm:$0xf0]  ;;  %v2649_v46 = vor.u32 %v3122_v37, %v2646_v40  ;;  %v2996_v50 = vld [vmem:[#allocation8 + $0x74] sm:$0xf] }
  0x3d   :  { %1649 = vmatpush.bf16.msrb.mxu0 %v2113_v43  ;;  %1662 = vmatpush.bf16.msrb.mxu1 %v2337_v44  ;;  %v2170_v43 = vld [vmem:[#allocation8 + $0xc4] sm:$0xf0]  ;;  %v3059_v44 = vld [vmem:[#allocation8 + $0x26c] sm:$0xf]  ;;  %v2873_v47 = vor.u32 %v3178_v41, %v2870_v42  ;;  %v2142_v51 = vld [vmem:[#allocation8 + $0x8c] sm:$0xf0] }
  0x3e   :  { %v2173_v48 = vor.u32 %v3003_v36, %v2170_v43  ;;  %v2397_v49 = vor.u32 %v3059_v44, %v2394_v45  ;;  %v3052_v52 = vld [vmem:[#allocation8 + $0x234] sm:$0xf]  ;;  %v2366_v53 = vld [vmem:[#allocation8 + $0x24c] sm:$0xf0]  ;;  %v3115_v56 = vld [vmem:[#allocation8 + $0x42c] sm:$0xf] }
  0x3f   :  { %1675 = vmatpush.bf16.msrb.mxu2 %v2561_v54  ;;  %1688 = vmatpush.bf16.msrb.mxu3 %v2785_v55  ;;  %v2145_v54 = vor.u32 %v2996_v50, %v2142_v51  ;;  %v2369_v55 = vor.u32 %v3052_v52, %v2366_v53  ;;  %v2618_v57 = vld [vmem:[#allocation8 + $0x444] sm:$0xf0]  ;;  %v2989_v62 = vld [vmem:[#allocation8 + $0x3c] sm:$0xf]  ;;  %v2114_v63 = vld [vmem:[#allocation8 + $0x54] sm:$0xf0] }
  0x40   :  { %v2842_v60 = vld [vmem:[#allocation8 + $0x604] sm:$0xf0]  ;;  %v2338_v2 = vld [vmem:[#allocation8 + $0x214] sm:$0xf0]  ;;  %v3108_v4 = vld [vmem:[#allocation8 + $0x3f4] sm:$0xf] }
  0x41   :  { %1650 = vmatpush.bf16.msrb.mxu0 %v2085_v58  ;;  %1663 = vmatpush.bf16.msrb.mxu1 %v2309_v59  ;;  %v3171_v58 = vld [vmem:[#allocation8 + $0x5ec] sm:$0xf]  ;;  %v2621_v59 = vor.u32 %v3115_v56, %v2618_v57  ;;  %v2590_v5 = vld [vmem:[#allocation8 + $0x40c] sm:$0xf0]  ;;  %v3164_v6 = vld [vmem:[#allocation8 + $0x5b4] sm:$0xf] }
  0x42   :  { %v2845_v61 = vor.u32 %v3171_v58, %v2842_v60  ;;  %v2593_v7 = vor.u32 %v3108_v4, %v2590_v5  ;;  %v3038_v12 = vld [vmem:[#allocation8 + $0x1c4] sm:$0xf]  ;;  %v3101_v16 = vld [vmem:[#allocation8 + $0x3bc] sm:$0xf]  ;;  %v2562_v17 = vld [vmem:[#allocation8 + $0x3d4] sm:$0xf0] }
  0x43   :  { %1676 = vmatpush.bf16.msrb.mxu2 %v2533_v8  ;;  %1689 = vmatpush.bf16.msrb.mxu3 %v2757_v9  ;;  %v2814_v8 = vld [vmem:[#allocation8 + $0x5cc] sm:$0xf0]  ;;  %v2565_v18 = vor.u32 %v3101_v16, %v2562_v17  ;;  %v3157_v19 = vld [vmem:[#allocation8 + $0x57c] sm:$0xf]  ;;  %v2786_v20 = vld [vmem:[#allocation8 + $0x594] sm:$0xf0] }
  0x44   :  { %v2817_v9 = vor.u32 %v3164_v6, %v2814_v8  ;;  %v2789_v21 = vor.u32 %v3157_v19, %v2786_v20  ;;  %v3150_v25 = vld [vmem:[#allocation8 + $0x544] sm:$0xf]  ;;  %v102_v28 = vld [vmem:[#allocation7] sm:$0xf]  ;;  %v2288_v33 = vld [vmem:[#allocation8 + $0x190] sm:$0xf] }
  0x45   :  { %1695 = vmatpush.bf16.msra.mxu0 %v2285_v0  ;;  %1708 = vmatpush.bf16.msra.mxu1 %v2509_v1  ;;  %v2117_v0 = vor.u32 %v2989_v62, %v2114_v63  ;;  %v3045_v1 = vld [vmem:[#allocation8 + $0x1fc] sm:$0xf]  ;;  %v104_v29 = vperm.slane %v102_v28, 0  ;;  %v105_v30 = vperm.slane %v102_v28, 1  ;;  %v3035_v36 = vld [vmem:[#allocation8 + $0x1a8] sm:$0xf0] }
  0x46   :  { %v2341_v3 = vor.u32 %v3045_v1, %v2338_v2  ;;  %v2512_v37 = vld [vmem:[#allocation8 + $0x350] sm:$0xf]  ;;  %v106_v41 = vperm.slane %v102_v28, 2  ;;  %v107_v42 = vperm.slane %v102_v28, 3  ;;  %v2289_v43 = vor.u32 %v3035_v36, %v2288_v33  ;;  %v2260_v45 = vld [vmem:[#allocation8 + $0x158] sm:$0xf] }
  0x47   :  { %1721 = vmatpush.bf16.msra.mxu2 %v2733_v10  ;;  %1734 = vmatpush.bf16.msra.mxu3 %v2957_v11  ;;  %v2982_v10 = vld [vmem:[#allocation8 + $0x4] sm:$0xf]  ;;  %v2086_v11 = vld [vmem:[#allocation8 + $0x1c] sm:$0xf0]  ;;  %v3084_v50 = vld [vmem:[#allocation8 + $0x330] sm:$0xf0] }
  0x48   :  { %v2089_v13 = vor.u32 %v2982_v10, %v2086_v11  ;;  %v2960_v56 = vld [vmem:[#allocation8 + $0x6d0] sm:$0xf]  ;;  %v3203_v62 = vld [vmem:[#allocation8 + $0x6e8] sm:$0xf0]  ;;  %v2232_v63 = vld [vmem:[#allocation8 + $0x120] sm:$0xf] }
  0x49   :  { %1696 = vmatpush.bf16.msra.mxu0 %v2257_v14  ;;  %1709 = vmatpush.bf16.msra.mxu1 %v2481_v15  ;;  %v2310_v14 = vld [vmem:[#allocation8 + $0x1dc] sm:$0xf0]  ;;  %v3077_v2 = vld [vmem:[#allocation8 + $0x2f8] sm:$0xf0]  ;;  %v2961_v6 = vor.u32 %v3203_v62, %v2960_v56  ;;  %v2708_v8 = vld [vmem:[#allocation8 + $0x4d8] sm:$0xf] }
  0x4a   :  { %v2313_v15 = vor.u32 %v3038_v12, %v2310_v14  ;;  %v2456_v1 = vld [vmem:[#allocation8 + $0x2e0] sm:$0xf]  ;;  %v3196_v14 = vld [vmem:[#allocation8 + $0x6b0] sm:$0xf0]  ;;  %v3014_v16 = vld [vmem:[#allocation8 + $0x100] sm:$0xf0] }
  0x4b   :  { %1722 = vmatpush.bf16.msra.mxu2 %v2705_v22  ;;  %1735 = vmatpush.bf16.msra.mxu3 %v2929_v23  ;;  %v3094_v22 = vld [vmem:[#allocation8 + $0x384] sm:$0xf]  ;;  %v2534_v23 = vld [vmem:[#allocation8 + $0x39c] sm:$0xf0]  ;;  %v2457_v12 = vor.u32 %v3077_v2, %v2456_v1  ;;  %v2428_v17 = vld [vmem:[#allocation8 + $0x2a8] sm:$0xf] }
  0x4c   :  { %v2537_v24 = vor.u32 %v3094_v22, %v2534_v23  ;;  %v2680_v23 = vld [vmem:[#allocation8 + $0x4a0] sm:$0xf]  ;;  %v3189_v28 = vld [vmem:[#allocation8 + $0x678] sm:$0xf0]  ;;  %v3126_v36 = vld [vmem:[#allocation8 + $0x480] sm:$0xf0] }
  0x4d   :  { %1697 = vmatpush.bf16.msra.mxu0 %v2229_v26  ;;  %1710 = vmatpush.bf16.msra.mxu1 %v2453_v27  ;;  %v2758_v26 = vld [vmem:[#allocation8 + $0x55c] sm:$0xf0]  ;;  %v2993_v56 = vld [vmem:[#allocation8 + $0x58] sm:$0xf0]  ;;  %v3112_v62 = vld [vmem:[#allocation8 + $0x410] sm:$0xf0] }
  0x4e   :  { %v2761_v27 = vor.u32 %v3150_v25, %v2758_v26  ;;  %v3133_v26 = vld [vmem:[#allocation8 + $0x4b8] sm:$0xf0]  ;;  %s2048_s4 = sshll.u32 %s3391_s2, 4  ;;  %s2050_s21 = sshll.u32 %s3498_s5, 4  ;;  %vm2041_vm2 = vcmask 130048   ;;  %s2049_s4 = int_to_ptr.vmem [resolvable:$true] %s2048_s4  ;;  %s2051_s21 = int_to_ptr.hbm [resolvable:$true] %s2050_s21 }
  0x4f   :  { %1723 = vmatpush.bf16.msra.mxu2 %v2677_v34  ;;  %1736 = vmatpush.bf16.msra.mxu3 %v2901_v35  ;;  %v2681_v33 = vor.u32 %v3133_v26, %v2680_v23  ;;  %v3025_v23 = vld [vmem:[#allocation8 + $0x15c] sm:$0xf] }
  0x51   :  { %1698 = vmatpush.bf16.msra.mxu0 %v2201_v38  ;;  %1711 = vmatpush.bf16.msra.mxu1 %v2425_v39  ;;  %v3091_v38 = vld [vmem:[#allocation8 + $0x368] sm:$0xf0] }
  0x52   :  { %v2513_v44 = vor.u32 %v3091_v38, %v2512_v37  ;;  %v2876_v37 = vld [vmem:[#allocation8 + $0x628] sm:$0xf]  ;;  %v3182_v38 = vld [vmem:[#allocation8 + $0x640] sm:$0xf0] }
  0x53   :  { %1724 = vmatpush.bf16.msra.mxu2 %v2649_v46  ;;  %1737 = vmatpush.bf16.msra.mxu3 %v2873_v47  ;;  %v3028_v46 = vld [vmem:[#allocation8 + $0x170] sm:$0xf0] }
  0x54   :  { %v2261_v53 = vor.u32 %v3028_v46, %v2260_v45  ;;  %v2877_v46 = vor.u32 %v3182_v38, %v2876_v37 }
  0x55   :  { %1699 = vmatpush.bf16.msra.mxu0 %v2173_v48  ;;  %1712 = vmatpush.bf16.msra.mxu1 %v2397_v49  ;;  %v2484_v49 = vld [vmem:[#allocation8 + $0x318] sm:$0xf] }
  0x57   :  { %1725 = vmatpush.bf16.msra.mxu2 %v2621_v59  ;;  %1738 = vmatpush.bf16.msra.mxu3 %v2845_v61  ;;  %v2485_v61 = vor.u32 %v3084_v50, %v2484_v49  ;;  %v2624_v49 = vld [vmem:[#allocation8 + $0x430] sm:$0xf]  ;;  %v3119_v50 = vld [vmem:[#allocation8 + $0x448] sm:$0xf0] }
  0x59   :  { %1700 = vmatpush.bf16.msra.mxu0 %v2145_v54  ;;  %1713 = vmatpush.bf16.msra.mxu1 %v2369_v55  ;;  %v2736_v54 = vld [vmem:[#allocation8 + $0x510] sm:$0xf]  ;;  %v3147_v55 = vld [vmem:[#allocation8 + $0x528] sm:$0xf0] }
  0x5a   :  { %v2737_v5 = vor.u32 %v3147_v55, %v2736_v54  ;;  %v2120_v55 = vld [vmem:[#allocation8 + $0x40] sm:$0xf] }
  0x5b   :  { %1726 = vmatpush.bf16.msra.mxu2 %v2593_v7  ;;  %1739 = vmatpush.bf16.msra.mxu3 %v2817_v9  ;;  %v3140_v9 = vld [vmem:[#allocation8 + $0x4f0] sm:$0xf0]  ;;  %v2121_v1 = vor.u32 %v2993_v56, %v2120_v55  ;;  %v3011_v55 = vld [vmem:[#allocation8 + $0xec] sm:$0xf]  ;;  %v2206_v56 = vld [vmem:[#allocation8 + $0x104] sm:$0xf0] }
  0x5d   :  { %1701 = vmatpush.bf16.msra.mxu0 %v2117_v0  ;;  %1714 = vmatpush.bf16.msra.mxu1 %v2341_v3  ;;  %v3021_v0 = vld [vmem:[#allocation8 + $0x138] sm:$0xf0] }
  0x5e   :  { %v2233_v7 = vor.u32 %v3021_v0, %v2232_v63  ;;  %v2820_v63 = vld [vmem:[#allocation8 + $0x5b8] sm:$0xf]  ;;  %v3168_v0 = vld [vmem:[#allocation8 + $0x5d0] sm:$0xf0] }
  0x5f   :  { %1727 = vmatpush.bf16.msra.mxu2 %v2565_v18  ;;  %1740 = vmatpush.bf16.msra.mxu3 %v2789_v21  ;;  %v3070_v18 = vld [vmem:[#allocation8 + $0x2c0] sm:$0xf0]  ;;  %v2709_v21 = vor.u32 %v3140_v9, %v2708_v8  ;;  %v2290_v8 = vld [vmem:[#allocation8 + $0x1ac] sm:$0xf0] }
  0x60   :  { %v2429_v25 = vor.u32 %v3070_v18, %v2428_v17  ;;  %v2792_v17 = vld [vmem:[#allocation8 + $0x580] sm:$0xf]  ;;  %v3161_v18 = vld [vmem:[#allocation8 + $0x598] sm:$0xf0] }
  0x61   :  { %1702 = vmatpush.bf16.msra.mxu0 %v2089_v13  ;;  %1715 = vmatpush.bf16.msra.mxu1 %v2313_v15  ;;  %v2932_v13 = vld [vmem:[#allocation8 + $0x698] sm:$0xf]  ;;  %v2204_v15 = vld [vmem:[#allocation8 + $0xe8] sm:$0xf] }
  0x62   :  { %v2933_v22 = vor.u32 %v3196_v14, %v2932_v13  ;;  %v3088_v13 = vld [vmem:[#allocation8 + $0x354] sm:$0xf]  ;;  %v2514_v14 = vld [vmem:[#allocation8 + $0x36c] sm:$0xf0] }
  0x63   :  { %1728 = vmatpush.bf16.msra.mxu2 %v2537_v24  ;;  %1741 = vmatpush.bf16.msra.mxu3 %v2761_v27  ;;  %v2205_v24 = vor.u32 %v3014_v16, %v2204_v15  ;;  %v2904_v27 = vld [vmem:[#allocation8 + $0x660] sm:$0xf]  ;;  %v3105_v16 = vld [vmem:[#allocation8 + $0x3d8] sm:$0xf0] }
  0x64   :  { %v2568_v15 = vld [vmem:[#allocation8 + $0x3c0] sm:$0xf] }
  0x65   :  { %v2569_v26 = vor.u32 %v3105_v16, %v2568_v15 }
  0xa1   :  { %v168_v31 = vpop.f32.mrf.mxu0  ;;  %v181_v32 = vpop.f32.mrf.mxu1 }
  0xa2   :  { %v169_v34 = vadd.f32 %v168_v31, %v104_v29  ;;  %v182_v35 = vadd.f32 %v181_v32, %v105_v30  ;;  %v2176_v29 = vld [vmem:[#allocation8 + $0xb0] sm:$0xf]  ;;  %v3007_v30 = vld [vmem:[#allocation8 + $0xc8] sm:$0xf0] }
  0xa3   :  { %v2400_v31 = vld [vmem:[#allocation8 + $0x270] sm:$0xf]  ;;  %v3063_v32 = vld [vmem:[#allocation8 + $0x288] sm:$0xf0] }
  0xa4   :  { %v211_v39 = vmax.f32 %v169_v34, 0.0  ;;  %v212_v40 = vmax.f32 %v182_v35, 0.0  ;;  %v2905_v34 = vor.u32 %v3189_v28, %v2904_v27  ;;  %v2652_v35 = vld [vmem:[#allocation8 + $0x468] sm:$0xf]  ;;  %v2793_v27 = vor.u32 %v3161_v18, %v2792_v17  ;;  %v2486_v28 = vld [vmem:[#allocation8 + $0x334] sm:$0xf0] }
  0xa5   :  { %v2653_v45 = vor.u32 %v3126_v36, %v2652_v35  ;;  %v3200_v35 = vld [vmem:[#allocation8 + $0x6d4] sm:$0xf]  ;;  %v2962_v36 = vld [vmem:[#allocation8 + $0x6ec] sm:$0xf0]  ;;  %v2997_v17 = vld [vmem:[#allocation8 + $0x7c] sm:$0xf] }
  0xa6   :  { %v3445_v47 = vpack.c.bf16 %v211_v39, %v211_v39  ;;  %v3447_v48 = vpack.c.bf16 %v212_v40, %v212_v40  ;;  %v2177_v39 = vor.u32 %v3007_v30, %v2176_v29  ;;  %v2401_v40 = vor.u32 %v3063_v32, %v2400_v31  ;;  %v2540_v29 = vld [vmem:[#allocation8 + $0x388] sm:$0xf]  ;;  %v3098_v30 = vld [vmem:[#allocation8 + $0x3a0] sm:$0xf0]  ;;  %v2150_v18 = vld [vmem:[#allocation8 + $0x94] sm:$0xf0] }
  0xa7   :  { %v2764_v31 = vld [vmem:[#allocation8 + $0x548] sm:$0xf]  ;;  %v3154_v32 = vld [vmem:[#allocation8 + $0x560] sm:$0xf0] }
  0xa8   :  { %1651 = vmatmul.bf16.vlgmr.msrb.gmra.mxu0 %v3445_v47  ;;  %1664 = vmatmul.bf16.vlgmr.msrb.gmra.mxu1 %v3447_v48 }
  0xa9   :  { %v194_v51 = vpop.f32.mrf.mxu2  ;;  %v207_v52 = vpop.f32.mrf.mxu3  ;;  %1747 = vmatpush.bf16.msrb.mxu0 %v2289_v43  ;;  %1760 = vmatpush.bf16.msrb.mxu1 %v2513_v44  ;;  %v2372_v43 = vld [vmem:[#allocation8 + $0x238] sm:$0xf]  ;;  %v3056_v44 = vld [vmem:[#allocation8 + $0x250] sm:$0xf0] }
  0xaa   :  { %v195_v57 = vadd.f32 %v194_v51, %v106_v41  ;;  %v208_v58 = vadd.f32 %v207_v52, %v107_v42  ;;  %v170_v59 = vpop.f32.mrf.mxu0  ;;  %v183_v60 = vpop.f32.mrf.mxu1  ;;  %v2148_v41 = vld [vmem:[#allocation8 + $0x78] sm:$0xf]  ;;  %v3000_v42 = vld [vmem:[#allocation8 + $0x90] sm:$0xf0]  ;;  %v2848_v51 = vld [vmem:[#allocation8 + $0x5f0] sm:$0xf]  ;;  %v2373_v54 = vor.u32 %v3056_v44, %v2372_v43 }
  0xab   :  { %v3175_v52 = vld [vmem:[#allocation8 + $0x608] sm:$0xf0]  ;;  %v2625_v59 = vor.u32 %v3119_v50, %v2624_v49  ;;  %v3074_v43 = vld [vmem:[#allocation8 + $0x2e4] sm:$0xf]  ;;  %v2458_v44 = vld [vmem:[#allocation8 + $0x2fc] sm:$0xf0] }
  0xac   :  { %v213_v3 = vmax.f32 %v195_v57, 0.0  ;;  %v214_v4 = vmax.f32 %v208_v58, 0.0  ;;  %v2344_v57 = vld [vmem:[#allocation8 + $0x200] sm:$0xf]  ;;  %v3049_v58 = vld [vmem:[#allocation8 + $0x218] sm:$0xf0]  ;;  %v2849_v60 = vor.u32 %v3175_v52, %v2848_v51 }
  0xad   :  { %1748 = vmatpush.bf16.msrb.mxu0 %v2261_v53  ;;  %1761 = vmatpush.bf16.msrb.mxu1 %v2485_v61  ;;  %v2149_v53 = vor.u32 %v3000_v42, %v2148_v41  ;;  %v2596_v61 = vld [vmem:[#allocation8 + $0x3f8] sm:$0xf]  ;;  %v2345_v2 = vor.u32 %v3049_v58, %v2344_v57  ;;  %v2765_v41 = vor.u32 %v3154_v32, %v2764_v31  ;;  %v2234_v42 = vld [vmem:[#allocation8 + $0x13c] sm:$0xf0]  ;;  %v3137_v49 = vld [vmem:[#allocation8 + $0x4dc] sm:$0xf] }
  0xae   :  { %v3451_v10 = vpack.c.bf16 %v213_v3, %v213_v3  ;;  %v3453_v11 = vpack.c.bf16 %v214_v4, %v214_v4  ;;  %v2092_v3 = vld [vmem:[#allocation8 + $0x8] sm:$0xf]  ;;  %v2986_v4 = vld [vmem:[#allocation8 + $0x20] sm:$0xf0]  ;;  %v2597_v9 = vor.u32 %v3112_v62, %v2596_v61  ;;  %v2710_v50 = vld [vmem:[#allocation8 + $0x4f4] sm:$0xf0] }
  0xaf   :  { %v3193_v51 = vld [vmem:[#allocation8 + $0x69c] sm:$0xf]  ;;  %v2934_v52 = vld [vmem:[#allocation8 + $0x6b4] sm:$0xf0]  ;;  %v3067_v57 = vld [vmem:[#allocation8 + $0x2ac] sm:$0xf] }
  0xb0   :  { %1677 = vmatmul.bf16.vlgmr.msrb.gmra.mxu2 %v3451_v10  ;;  %1690 = vmatmul.bf16.vlgmr.msrb.gmra.mxu3 %v3453_v11  ;;  %v2430_v58 = vld [vmem:[#allocation8 + $0x2c4] sm:$0xf0]  ;;  %v3130_v61 = vld [vmem:[#allocation8 + $0x4a4] sm:$0xf]  ;;  %v2682_v62 = vld [vmem:[#allocation8 + $0x4bc] sm:$0xf0] }
  0xb1   :  { %1773 = vmatpush.bf16.msrb.mxu2 %v2737_v5  ;;  %1786 = vmatpush.bf16.msrb.mxu3 %v2961_v6  ;;  %v196_v19 = vpop.f32.mrf.mxu2  ;;  %v209_v20 = vpop.f32.mrf.mxu3  ;;  %v2316_v5 = vld [vmem:[#allocation8 + $0x1c8] sm:$0xf]  ;;  %v3042_v6 = vld [vmem:[#allocation8 + $0x1e0] sm:$0xf0]  ;;  %v2346_v32 = vld [vmem:[#allocation8 + $0x21c] sm:$0xf0] }
  0xb2   :  { %1749 = vmatpush.bf16.msrb.mxu0 %v2233_v7  ;;  %1762 = vmatpush.bf16.msrb.mxu1 %v2457_v12  ;;  %v3032_v7 = vld [vmem:[#allocation8 + $0x194] sm:$0xf]  ;;  %v2821_v12 = vor.u32 %v3168_v0, %v2820_v63  ;;  %v2093_v19 = vor.u32 %v2986_v4, %v2092_v3  ;;  %v2317_v20 = vor.u32 %v3042_v6, %v2316_v5  ;;  %v3186_v63 = vld [vmem:[#allocation8 + $0x664] sm:$0xf]  ;;  %v2906_v0 = vld [vmem:[#allocation8 + $0x67c] sm:$0xf0] }
  0xb3   :  { %v3004_v3 = vld [vmem:[#allocation8 + $0xb4] sm:$0xf]  ;;  %v2178_v4 = vld [vmem:[#allocation8 + $0xcc] sm:$0xf0]  ;;  %v3046_v31 = vld [vmem:[#allocation8 + $0x204] sm:$0xf] }
  0xb4   :  { %v3060_v5 = vld [vmem:[#allocation8 + $0x274] sm:$0xf]  ;;  %v2402_v6 = vld [vmem:[#allocation8 + $0x28c] sm:$0xf0]  ;;  %v2181_v15 = vor.u32 %v3004_v3, %v2178_v4  ;;  %v3095_v3 = vld [vmem:[#allocation8 + $0x38c] sm:$0xf] }
  0xb5   :  { %1774 = vmatpush.bf16.msrb.mxu2 %v2709_v21  ;;  %1787 = vmatpush.bf16.msrb.mxu3 %v2933_v22  ;;  %v2293_v21 = vor.u32 %v3032_v7, %v2290_v8  ;;  %v2517_v22 = vor.u32 %v3088_v13, %v2514_v14  ;;  %v2685_v7 = vor.u32 %v3130_v61, %v2682_v62  ;;  %v3179_v13 = vld [vmem:[#allocation8 + $0x62c] sm:$0xf]  ;;  %v2878_v14 = vld [vmem:[#allocation8 + $0x644] sm:$0xf0]  ;;  %v2268_v61 = vld [vmem:[#allocation8 + $0x160] sm:$0xf] }
  0xb6   :  { %1750 = vmatpush.bf16.msrb.mxu0 %v2205_v24  ;;  %1763 = vmatpush.bf16.msrb.mxu1 %v2429_v25  ;;  %v2262_v24 = vld [vmem:[#allocation8 + $0x174] sm:$0xf0]  ;;  %v3081_v25 = vld [vmem:[#allocation8 + $0x31c] sm:$0xf]  ;;  %v2909_v8 = vor.u32 %v3186_v63, %v2906_v0  ;;  %v2405_v16 = vor.u32 %v3060_v5, %v2402_v6  ;;  %v2492_v63 = vld [vmem:[#allocation8 + $0x320] sm:$0xf] }
  0xb7   :  { %v2265_v37 = vor.u32 %v3025_v23, %v2262_v24  ;;  %v2489_v38 = vor.u32 %v3081_v25, %v2486_v28  ;;  %v3116_v23 = vld [vmem:[#allocation8 + $0x434] sm:$0xf]  ;;  %v2626_v24 = vld [vmem:[#allocation8 + $0x44c] sm:$0xf0]  ;;  %v3029_v62 = vld [vmem:[#allocation8 + $0x178] sm:$0xf0] }
  0xb8   :  { %1703 = vmatmul.bf16.vlgmr.msra.gmra.mxu0 %v3445_v47  ;;  %1716 = vmatmul.bf16.vlgmr.msra.gmra.mxu1 %v3447_v48  ;;  %v3172_v25 = vld [vmem:[#allocation8 + $0x5f4] sm:$0xf]  ;;  %v2542_v4 = vld [vmem:[#allocation8 + $0x3a4] sm:$0xf0]  ;;  %v3151_v5 = vld [vmem:[#allocation8 + $0x54c] sm:$0xf] }
  0xb9   :  { %1775 = vmatpush.bf16.msrb.mxu2 %v2681_v33  ;;  %1788 = vmatpush.bf16.msrb.mxu3 %v2905_v34  ;;  %v3144_v33 = vld [vmem:[#allocation8 + $0x514] sm:$0xf]  ;;  %v2738_v34 = vld [vmem:[#allocation8 + $0x52c] sm:$0xf0]  ;;  %v2766_v6 = vld [vmem:[#allocation8 + $0x564] sm:$0xf0] }
  0xba   :  { %1751 = vmatpush.bf16.msrb.mxu0 %v2177_v39  ;;  %1764 = vmatpush.bf16.msrb.mxu1 %v2401_v40  ;;  %v3018_v39 = vld [vmem:[#allocation8 + $0x124] sm:$0xf]  ;;  %v2541_v40 = vor.u32 %v3098_v30, %v2540_v29  ;;  %v2122_v30 = vld [vmem:[#allocation8 + $0x5c] sm:$0xf0] }
  0xbb   :  { %v2990_v29 = vld [vmem:[#allocation8 + $0x44] sm:$0xf] }
  0xbd   :  { %1776 = vmatpush.bf16.msrb.mxu2 %v2653_v45  ;;  %1789 = vmatpush.bf16.msrb.mxu3 %v2877_v46  ;;  %v2741_v45 = vor.u32 %v3144_v33, %v2738_v34  ;;  %v2965_v46 = vor.u32 %v3200_v35, %v2962_v36  ;;  %v2629_v33 = vor.u32 %v3116_v23, %v2626_v24  ;;  %v3109_v35 = vld [vmem:[#allocation8 + $0x3fc] sm:$0xf]  ;;  %v2598_v36 = vld [vmem:[#allocation8 + $0x414] sm:$0xf0]  ;;  %v2716_v23 = vld [vmem:[#allocation8 + $0x4e0] sm:$0xf] }
  0xbe   :  { %1752 = vmatpush.bf16.msrb.mxu0 %v2149_v53  ;;  %1765 = vmatpush.bf16.msrb.mxu1 %v2373_v54  ;;  %v2237_v53 = vor.u32 %v3018_v39, %v2234_v42  ;;  %v2461_v54 = vor.u32 %v3074_v43, %v2458_v44  ;;  %v2125_v39 = vor.u32 %v2990_v29, %v2122_v30  ;;  %v2094_v42 = vld [vmem:[#allocation8 + $0x24] sm:$0xf0]  ;;  %v3039_v43 = vld [vmem:[#allocation8 + $0x1cc] sm:$0xf]  ;;  %v3141_v24 = vld [vmem:[#allocation8 + $0x4f8] sm:$0xf0] }
  0xbf   :  { %v2318_v44 = vld [vmem:[#allocation8 + $0x1e4] sm:$0xf0]  ;;  %v2212_v29 = vld [vmem:[#allocation8 + $0xf0] sm:$0xf]  ;;  %v3015_v30 = vld [vmem:[#allocation8 + $0x108] sm:$0xf0] }
  0xc0   :  { %1729 = vmatmul.bf16.vlgmr.msra.gmra.mxu2 %v3451_v10  ;;  %1742 = vmatmul.bf16.vlgmr.msra.gmra.mxu3 %v3453_v11 }
  0xc1   :  { %1777 = vmatpush.bf16.msrb.mxu2 %v2625_v59  ;;  %1790 = vmatpush.bf16.msrb.mxu3 %v2849_v60  ;;  %v2713_v59 = vor.u32 %v3137_v49, %v2710_v50  ;;  %v2937_v60 = vor.u32 %v3193_v51, %v2934_v52  ;;  %v2601_v49 = vor.u32 %v3109_v35, %v2598_v36  ;;  %v2520_v51 = vld [vmem:[#allocation8 + $0x358] sm:$0xf]  ;;  %v3092_v52 = vld [vmem:[#allocation8 + $0x370] sm:$0xf0]  ;;  %v2688_v35 = vld [vmem:[#allocation8 + $0x4a8] sm:$0xf] }
  0xc2   :  { %1753 = vmatpush.bf16.msrb.mxu0 %v2121_v1  ;;  %1766 = vmatpush.bf16.msrb.mxu1 %v2345_v2  ;;  %v2209_v1 = vor.u32 %v3011_v55, %v2206_v56  ;;  %v2433_v2 = vor.u32 %v3067_v57, %v2430_v58  ;;  %v3158_v55 = vld [vmem:[#allocation8 + $0x584] sm:$0xf]  ;;  %v2794_v56 = vld [vmem:[#allocation8 + $0x59c] sm:$0xf0]  ;;  %v2321_v58 = vor.u32 %v3039_v43, %v2318_v44 }
  0xc3   :  { %v3134_v36 = vld [vmem:[#allocation8 + $0x4c0] sm:$0xf0] }
  0xc4   :  { %v2689_v43 = vor.u32 %v3134_v36, %v2688_v35  ;;  %v3026_v35 = vld [vmem:[#allocation8 + $0x164] sm:$0xf]  ;;  %v2270_v36 = vld [vmem:[#allocation8 + $0x17c] sm:$0xf0] }
  0xc5   :  { %1778 = vmatpush.bf16.msrb.mxu2 %v2597_v9  ;;  %1791 = vmatpush.bf16.msrb.mxu3 %v2821_v12  ;;  %v3123_v9 = vld [vmem:[#allocation8 + $0x46c] sm:$0xf]  ;;  %v2654_v12 = vld [vmem:[#allocation8 + $0x484] sm:$0xf0] }
  0xc6   :  { %1754 = vmatpush.bf16.msrb.mxu0 %v2093_v19  ;;  %1767 = vmatpush.bf16.msrb.mxu1 %v2317_v20  ;;  %v3053_v19 = vld [vmem:[#allocation8 + $0x23c] sm:$0xf]  ;;  %v2374_v20 = vld [vmem:[#allocation8 + $0x254] sm:$0xf0] }
  0xc7   :  { %v2377_v28 = vor.u32 %v3053_v19, %v2374_v20 }
  0xc9   :  { %1779 = vmatpush.bf16.msrb.mxu2 %v2569_v26  ;;  %1792 = vmatpush.bf16.msrb.mxu3 %v2793_v27  ;;  %v2850_v26 = vld [vmem:[#allocation8 + $0x60c] sm:$0xf0]  ;;  %v2153_v27 = vor.u32 %v2997_v17, %v2150_v18  ;;  %v2240_v17 = vld [vmem:[#allocation8 + $0x128] sm:$0xf]  ;;  %v3022_v18 = vld [vmem:[#allocation8 + $0x140] sm:$0xf0] }
  0xca   :  { %1799 = vmatpush.bf16.msra.mxu0 %v2293_v21  ;;  %1812 = vmatpush.bf16.msra.mxu1 %v2517_v22  ;;  %v2657_v21 = vor.u32 %v3123_v9, %v2654_v12  ;;  %v2881_v22 = vor.u32 %v3179_v13, %v2878_v14  ;;  %v2853_v34 = vor.u32 %v3172_v25, %v2850_v26  ;;  %v2968_v9 = vld [vmem:[#allocation8 + $0x6d8] sm:$0xf]  ;;  %v3204_v12 = vld [vmem:[#allocation8 + $0x6f0] sm:$0xf0]  ;;  %v2940_v25 = vld [vmem:[#allocation8 + $0x6a0] sm:$0xf] }
  0xcb   :  { %1755 = vmatmul.bf16.vlgmr.msrb.gmra.mxu0 %v3445_v47  ;;  %1768 = vmatmul.bf16.vlgmr.msrb.gmra.mxu1 %v3447_v48  ;;  %v2269_v13 = vor.u32 %v3029_v62, %v2268_v61  ;;  %v2969_v20 = vor.u32 %v3204_v12, %v2968_v9  ;;  %v3197_v26 = vld [vmem:[#allocation8 + $0x6b8] sm:$0xf0]  ;;  %v2632_v61 = vld [vmem:[#allocation8 + $0x438] sm:$0xf]  ;;  %v3120_v62 = vld [vmem:[#allocation8 + $0x450] sm:$0xf0] }
  0xcc   :  { %v2604_v9 = vld [vmem:[#allocation8 + $0x400] sm:$0xf]  ;;  %v3113_v12 = vld [vmem:[#allocation8 + $0x418] sm:$0xf0] }
  0xcd   :  { %1780 = vmatpush.bf16.msrb.mxu2 %v2541_v40  ;;  %1793 = vmatpush.bf16.msrb.mxu3 %v2765_v41  ;;  %v2349_v40 = vor.u32 %v3046_v31, %v2346_v32  ;;  %v2983_v41 = vld [vmem:[#allocation8 + $0xc] sm:$0xf]  ;;  %v2717_v31 = vor.u32 %v3141_v24, %v2716_v23  ;;  %v2941_v32 = vor.u32 %v3197_v26, %v2940_v25  ;;  %v3033_v23 = vld [vmem:[#allocation8 + $0x19c] sm:$0xf]  ;;  %v2298_v24 = vld [vmem:[#allocation8 + $0x1b4] sm:$0xf0] }
  0xce   :  { %1800 = vmatpush.bf16.msra.mxu0 %v2265_v37  ;;  %1813 = vmatpush.bf16.msra.mxu1 %v2489_v38  ;;  %v3165_v37 = vld [vmem:[#allocation8 + $0x5bc] sm:$0xf]  ;;  %v2822_v38 = vld [vmem:[#allocation8 + $0x5d4] sm:$0xf0]  ;;  %v2097_v57 = vor.u32 %v2983_v41, %v2094_v42  ;;  %v3008_v42 = vld [vmem:[#allocation8 + $0xd0] sm:$0xf0] }
  0xcf   :  { %v2825_v50 = vor.u32 %v3165_v37, %v2822_v38  ;;  %v2912_v37 = vld [vmem:[#allocation8 + $0x668] sm:$0xf]  ;;  %v3190_v38 = vld [vmem:[#allocation8 + $0x680] sm:$0xf0]  ;;  %v2184_v41 = vld [vmem:[#allocation8 + $0xb8] sm:$0xf] }
  0xd0   :  { %1781 = vmatmul.bf16.vlgmr.msrb.gmra.mxu2 %v3451_v10  ;;  %1794 = vmatmul.bf16.vlgmr.msrb.gmra.mxu3 %v3453_v11  ;;  %v2913_v44 = vor.u32 %v3190_v38, %v2912_v37  ;;  %v3089_v25 = vld [vmem:[#allocation8 + $0x35c] sm:$0xf]  ;;  %v2522_v26 = vld [vmem:[#allocation8 + $0x374] sm:$0xf0]  ;;  %v3082_v37 = vld [vmem:[#allocation8 + $0x324] sm:$0xf] }
  0xd1   :  { %1825 = vmatpush.bf16.msra.mxu2 %v2741_v45  ;;  %1838 = vmatpush.bf16.msra.mxu3 %v2965_v46  ;;  %v2296_v45 = vld [vmem:[#allocation8 + $0x198] sm:$0xf]  ;;  %v3036_v46 = vld [vmem:[#allocation8 + $0x1b0] sm:$0xf0] }
  0xd2   :  { %1801 = vmatpush.bf16.msra.mxu0 %v2237_v53  ;;  %1814 = vmatpush.bf16.msra.mxu1 %v2461_v54  ;;  %v3102_v53 = vld [vmem:[#allocation8 + $0x3c4] sm:$0xf]  ;;  %v2570_v54 = vld [vmem:[#allocation8 + $0x3dc] sm:$0xf0] }
  0xd3   :  { %v2573_v0 = vor.u32 %v3102_v53, %v2570_v54  ;;  %v2185_v53 = vor.u32 %v3008_v42, %v2184_v41  ;;  %v2548_v41 = vld [vmem:[#allocation8 + $0x390] sm:$0xf]  ;;  %v3099_v42 = vld [vmem:[#allocation8 + $0x3a8] sm:$0xf0] }
  0xd5   :  { %1826 = vmatpush.bf16.msra.mxu2 %v2713_v59  ;;  %1839 = vmatpush.bf16.msra.mxu3 %v2937_v60  ;;  %v2297_v59 = vor.u32 %v3036_v46, %v2296_v45  ;;  %v2521_v60 = vor.u32 %v3092_v52, %v2520_v51  ;;  %v2408_v45 = vld [vmem:[#allocation8 + $0x278] sm:$0xf]  ;;  %v3064_v46 = vld [vmem:[#allocation8 + $0x290] sm:$0xf0]  ;;  %v2884_v51 = vld [vmem:[#allocation8 + $0x630] sm:$0xf] }
  0xd6   :  { %1802 = vmatpush.bf16.msra.mxu0 %v2209_v1  ;;  %1815 = vmatpush.bf16.msra.mxu1 %v2433_v2  ;;  %v2797_v1 = vor.u32 %v3158_v55, %v2794_v56  ;;  %v3085_v2 = vld [vmem:[#allocation8 + $0x338] sm:$0xf0]  ;;  %v3183_v52 = vld [vmem:[#allocation8 + $0x648] sm:$0xf0]  ;;  %v2409_v54 = vor.u32 %v3064_v46, %v2408_v45  ;;  %v2156_v55 = vld [vmem:[#allocation8 + $0x80] sm:$0xf] }
  0xd7   :  { %v2493_v14 = vor.u32 %v3085_v2, %v2492_v63  ;;  %v3001_v56 = vld [vmem:[#allocation8 + $0x98] sm:$0xf0]  ;;  %v2856_v63 = vld [vmem:[#allocation8 + $0x5f8] sm:$0xf] }
  0xd8   :  { %v3145_v45 = vld [vmem:[#allocation8 + $0x51c] sm:$0xf]  ;;  %v2746_v46 = vld [vmem:[#allocation8 + $0x534] sm:$0xf0] }
  0xd9   :  { %1827 = vmatpush.bf16.msra.mxu2 %v2685_v7  ;;  %1840 = vmatpush.bf16.msra.mxu3 %v2909_v8  ;;  %v2744_v7 = vld [vmem:[#allocation8 + $0x518] sm:$0xf]  ;;  %v3148_v8 = vld [vmem:[#allocation8 + $0x530] sm:$0xf0] }
  0xda   :  { %1803 = vmatpush.bf16.msra.mxu0 %v2181_v15  ;;  %1816 = vmatpush.bf16.msra.mxu1 %v2405_v16  ;;  %v2545_v15 = vor.u32 %v3095_v3, %v2542_v4  ;;  %v2769_v16 = vor.u32 %v3151_v5, %v2766_v6  ;;  %v2745_v19 = vor.u32 %v3148_v8, %v2744_v7  ;;  %v2128_v3 = vld [vmem:[#allocation8 + $0x48] sm:$0xf]  ;;  %v2994_v4 = vld [vmem:[#allocation8 + $0x60] sm:$0xf0] }
  0xdb   :  { %v2633_v5 = vor.u32 %v3120_v62, %v2632_v61  ;;  %v2352_v7 = vld [vmem:[#allocation8 + $0x208] sm:$0xf]  ;;  %v3050_v8 = vld [vmem:[#allocation8 + $0x220] sm:$0xf0]  ;;  %v2718_v62 = vld [vmem:[#allocation8 + $0x4fc] sm:$0xf0] }
  0xdc   :  { %v3138_v61 = vld [vmem:[#allocation8 + $0x4e4] sm:$0xf] }
  0xdd   :  { %1828 = vmatpush.bf16.msra.mxu2 %v2657_v21  ;;  %1841 = vmatpush.bf16.msra.mxu3 %v2881_v22  ;;  %v2464_v21 = vld [vmem:[#allocation8 + $0x2e8] sm:$0xf]  ;;  %v3078_v22 = vld [vmem:[#allocation8 + $0x300] sm:$0xf0] }
  0xde   :  { %1804 = vmatpush.bf16.msra.mxu0 %v2153_v27  ;;  %1817 = vmatpush.bf16.msra.mxu1 %v2377_v28  ;;  %v2241_v27 = vor.u32 %v3022_v18, %v2240_v17  ;;  %v2465_v28 = vor.u32 %v3078_v22, %v2464_v21  ;;  %v2100_v17 = vld [vmem:[#allocation8 + $0x10] sm:$0xf]  ;;  %v2987_v18 = vld [vmem:[#allocation8 + $0x28] sm:$0xf0] }
  0xdf   :  { %v3043_v22 = vld [vmem:[#allocation8 + $0x1e8] sm:$0xf0] }
  0xe1   :  { %1829 = vmatpush.bf16.msra.mxu2 %v2629_v33  ;;  %1842 = vmatpush.bf16.msra.mxu3 %v2853_v34  ;;  %v2436_v33 = vld [vmem:[#allocation8 + $0x2b0] sm:$0xf]  ;;  %v3071_v34 = vld [vmem:[#allocation8 + $0x2c8] sm:$0xf0] }
  0xe2   :  { %1805 = vmatpush.bf16.msra.mxu0 %v2125_v39  ;;  %1818 = vmatpush.bf16.msra.mxu1 %v2349_v40  ;;  %v2213_v39 = vor.u32 %v3015_v30, %v2212_v29  ;;  %v2437_v40 = vor.u32 %v3071_v34, %v2436_v33  ;;  %v2800_v29 = vld [vmem:[#allocation8 + $0x588] sm:$0xf]  ;;  %v3162_v30 = vld [vmem:[#allocation8 + $0x5a0] sm:$0xf0]  ;;  %v2301_v33 = vor.u32 %v3033_v23, %v2298_v24  ;;  %v3124_v23 = vld [vmem:[#allocation8 + $0x474] sm:$0xf] }
  0xe3   :  { %v2525_v34 = vor.u32 %v3089_v25, %v2522_v26  ;;  %v2662_v24 = vld [vmem:[#allocation8 + $0x48c] sm:$0xf0]  ;;  %v3180_v25 = vld [vmem:[#allocation8 + $0x634] sm:$0xf] }
  0xe4   :  { %v2886_v26 = vld [vmem:[#allocation8 + $0x64c] sm:$0xf0] }
  0xe5   :  { %1830 = vmatpush.bf16.msra.mxu2 %v2601_v49  ;;  %1843 = vmatpush.bf16.msra.mxu3 %v2825_v50  ;;  %v2660_v49 = vld [vmem:[#allocation8 + $0x470] sm:$0xf]  ;;  %v3127_v50 = vld [vmem:[#allocation8 + $0x488] sm:$0xf0] }
  0xe6   :  { %1806 = vmatpush.bf16.msra.mxu0 %v2097_v57  ;;  %1819 = vmatpush.bf16.msra.mxu1 %v2321_v58  ;;  %v2661_v57 = vor.u32 %v3127_v50, %v2660_v49  ;;  %v2885_v58 = vor.u32 %v3183_v52, %v2884_v51  ;;  %v3201_v49 = vld [vmem:[#allocation8 + $0x6dc] sm:$0xf]  ;;  %v2970_v50 = vld [vmem:[#allocation8 + $0x6f4] sm:$0xf0]  ;;  %v2273_v51 = vor.u32 %v3026_v35, %v2270_v36 }
  0xe7   :  { %v3117_v35 = vld [vmem:[#allocation8 + $0x43c] sm:$0xf]  ;;  %v2634_v36 = vld [vmem:[#allocation8 + $0x454] sm:$0xf0] }
  0xe9   :  { %1831 = vmatpush.bf16.msra.mxu2 %v2573_v0  ;;  %1844 = vmatpush.bf16.msra.mxu3 %v2797_v1  ;;  %v3176_v0 = vld [vmem:[#allocation8 + $0x610] sm:$0xf0]  ;;  %v2157_v1 = vor.u32 %v3001_v56, %v2156_v55  ;;  %v3019_v55 = vld [vmem:[#allocation8 + $0x12c] sm:$0xf]  ;;  %v2242_v56 = vld [vmem:[#allocation8 + $0x144] sm:$0xf0] }
  0xea   :  { %1851 = vmatpush.bf16.msrb.mxu0 %v2297_v59  ;;  %1864 = vmatpush.bf16.msrb.mxu1 %v2521_v60  ;;  %v2380_v59 = vld [vmem:[#allocation8 + $0x240] sm:$0xf]  ;;  %v3057_v60 = vld [vmem:[#allocation8 + $0x258] sm:$0xf0]  ;;  %v2857_v6 = vor.u32 %v3176_v0, %v2856_v63  ;;  %v3194_v63 = vld [vmem:[#allocation8 + $0x6a4] sm:$0xf] }
  0xeb   :  { %1807 = vmatmul.bf16.vlgmr.msra.gmra.mxu0 %v3445_v47  ;;  %1820 = vmatmul.bf16.vlgmr.msra.gmra.mxu1 %v3447_v48  ;;  %v2381_v2 = vor.u32 %v3057_v60, %v2380_v59  ;;  %v3075_v59 = vld [vmem:[#allocation8 + $0x2ec] sm:$0xf]  ;;  %v2466_v60 = vld [vmem:[#allocation8 + $0x304] sm:$0xf0]  ;;  %v2942_v0 = vld [vmem:[#allocation8 + $0x6bc] sm:$0xf0] }
  0xed   :  { %1832 = vmatpush.bf16.msra.mxu2 %v2545_v15  ;;  %1845 = vmatpush.bf16.msra.mxu3 %v2769_v16  ;;  %v2129_v15 = vor.u32 %v2994_v4, %v2128_v3  ;;  %v2353_v16 = vor.u32 %v3050_v8, %v2352_v7  ;;  %v3012_v3 = vld [vmem:[#allocation8 + $0xf4] sm:$0xf]  ;;  %v2214_v4 = vld [vmem:[#allocation8 + $0x10c] sm:$0xf0] }
  0xee   :  { %1852 = vmatpush.bf16.msrb.mxu0 %v2269_v13  ;;  %1865 = vmatpush.bf16.msrb.mxu1 %v2493_v14  ;;  %v2828_v13 = vld [vmem:[#allocation8 + $0x5c0] sm:$0xf]  ;;  %v3169_v14 = vld [vmem:[#allocation8 + $0x5d8] sm:$0xf0]  ;;  %v3068_v7 = vld [vmem:[#allocation8 + $0x2b4] sm:$0xf] }
  0xef   :  { %v2829_v21 = vor.u32 %v3169_v14, %v2828_v13  ;;  %v2438_v8 = vld [vmem:[#allocation8 + $0x2cc] sm:$0xf0]  ;;  %v3187_v13 = vld [vmem:[#allocation8 + $0x66c] sm:$0xf]  ;;  %v2914_v14 = vld [vmem:[#allocation8 + $0x684] sm:$0xf0] }
  0xf0   :  { %1833 = vmatmul.bf16.vlgmr.msra.gmra.mxu2 %v3451_v10  ;;  %1846 = vmatmul.bf16.vlgmr.msra.gmra.mxu3 %v3453_v11 }
  0xf1   :  { %1877 = vmatpush.bf16.msrb.mxu2 %v2745_v19  ;;  %1890 = vmatpush.bf16.msrb.mxu3 %v2969_v20  ;;  %v2324_v19 = vld [vmem:[#allocation8 + $0x1d0] sm:$0xf]  ;;  %v2605_v20 = vor.u32 %v3113_v12, %v2604_v9  ;;  %v3131_v9 = vld [vmem:[#allocation8 + $0x4ac] sm:$0xf]  ;;  %v2690_v12 = vld [vmem:[#allocation8 + $0x4c4] sm:$0xf0] }
  0xf2   :  { %1853 = vmatpush.bf16.msrb.mxu0 %v2241_v27  ;;  %1866 = vmatpush.bf16.msrb.mxu1 %v2465_v28  ;;  %v2576_v27 = vld [vmem:[#allocation8 + $0x3c8] sm:$0xf]  ;;  %v3106_v28 = vld [vmem:[#allocation8 + $0x3e0] sm:$0xf0] }
  0xf3   :  { %v2577_v38 = vor.u32 %v3106_v28, %v2576_v27 }
  0xf5   :  { %1878 = vmatpush.bf16.msrb.mxu2 %v2717_v31  ;;  %1891 = vmatpush.bf16.msrb.mxu3 %v2941_v32  ;;  %v2101_v31 = vor.u32 %v2987_v18, %v2100_v17  ;;  %v2325_v32 = vor.u32 %v3043_v22, %v2324_v19  ;;  %v3005_v17 = vld [vmem:[#allocation8 + $0xbc] sm:$0xf]  ;;  %v2186_v18 = vld [vmem:[#allocation8 + $0xd4] sm:$0xf0]  ;;  %v2693_v19 = vor.u32 %v3131_v9, %v2690_v12  ;;  %v2276_v9 = vld [vmem:[#allocation8 + $0x168] sm:$0xf] }
  0xf6   :  { %1854 = vmatpush.bf16.msrb.mxu0 %v2213_v39  ;;  %1867 = vmatpush.bf16.msrb.mxu1 %v2437_v40  ;;  %v2801_v39 = vor.u32 %v3162_v30, %v2800_v29  ;;  %v2494_v40 = vld [vmem:[#allocation8 + $0x33c] sm:$0xf0]  ;;  %v2410_v22 = vld [vmem:[#allocation8 + $0x294] sm:$0xf0]  ;;  %v2189_v27 = vor.u32 %v3005_v17, %v2186_v18  ;;  %v2998_v29 = vld [vmem:[#allocation8 + $0x84] sm:$0xf] }
  0xf7   :  { %v2497_v52 = vor.u32 %v3082_v37, %v2494_v40  ;;  %v2158_v30 = vld [vmem:[#allocation8 + $0x9c] sm:$0xf0]  ;;  %v3173_v37 = vld [vmem:[#allocation8 + $0x5fc] sm:$0xf]  ;;  %v3030_v12 = vld [vmem:[#allocation8 + $0x180] sm:$0xf0] }
  0xf8   :  { %v3096_v17 = vld [vmem:[#allocation8 + $0x394] sm:$0xf]  ;;  %v2550_v18 = vld [vmem:[#allocation8 + $0x3ac] sm:$0xf0] }
  0xf9   :  { %1879 = vmatpush.bf16.msrb.mxu2 %v2689_v43  ;;  %1892 = vmatpush.bf16.msrb.mxu3 %v2913_v44  ;;  %v2772_v43 = vld [vmem:[#allocation8 + $0x550] sm:$0xf]  ;;  %v3155_v44 = vld [vmem:[#allocation8 + $0x568] sm:$0xf0] }
  0xfa   :  { %1855 = vmatpush.bf16.msrb.mxu0 %v2185_v53  ;;  %1868 = vmatpush.bf16.msrb.mxu1 %v2409_v54  ;;  %v2549_v53 = vor.u32 %v3099_v42, %v2548_v41  ;;  %v2773_v54 = vor.u32 %v3155_v44, %v2772_v43  ;;  %v2991_v41 = vld [vmem:[#allocation8 + $0x4c] sm:$0xf]  ;;  %v2130_v42 = vld [vmem:[#allocation8 + $0x64] sm:$0xf0]  ;;  %v2637_v43 = vor.u32 %v3117_v35, %v2634_v36  ;;  %v3475_v35 = vld [vmem:[#allocation10] sm:$0xff] }
  0xfb   :  { %v2724_v36 = vld [vmem:[#allocation8 + $0x4e8] sm:$0xf] }
  0xfd   :  { %1880 = vmatpush.bf16.msrb.mxu2 %v2661_v57  ;;  %1893 = vmatpush.bf16.msrb.mxu3 %v2885_v58  ;;  %v2749_v57 = vor.u32 %v3145_v45, %v2746_v46  ;;  %v2973_v58 = vor.u32 %v3201_v49, %v2970_v50  ;;  %v3047_v45 = vld [vmem:[#allocation8 + $0x20c] sm:$0xf]  ;;  %v2354_v46 = vld [vmem:[#allocation8 + $0x224] sm:$0xf0]  ;;  %v3110_v49 = vld [vmem:[#allocation8 + $0x404] sm:$0xf] }
  0xfe   :  { %1856 = vmatpush.bf16.msrb.mxu0 %v2157_v1  ;;  %1869 = vmatpush.bf16.msrb.mxu1 %v2381_v2  ;;  %v2245_v1 = vor.u32 %v3019_v55, %v2242_v56  ;;  %v2469_v2 = vor.u32 %v3075_v59, %v2466_v60  ;;  %v2606_v50 = vld [vmem:[#allocation8 + $0x41c] sm:$0xf0]  ;;  %v2984_v55 = vld [vmem:[#allocation8 + $0x14] sm:$0xf]  ;;  %v2102_v56 = vld [vmem:[#allocation8 + $0x2c] sm:$0xf0] }
  0xff   :  { %v2326_v60 = vld [vmem:[#allocation8 + $0x1ec] sm:$0xf0] }
 0x101   :  { %1881 = vmatpush.bf16.msrb.mxu2 %v2633_v5  ;;  %1894 = vmatpush.bf16.msrb.mxu3 %v2857_v6  ;;  %v2721_v5 = vor.u32 %v3138_v61, %v2718_v62  ;;  %v2945_v6 = vor.u32 %v3194_v63, %v2942_v0  ;;  %v2304_v61 = vld [vmem:[#allocation8 + $0x1a0] sm:$0xf]  ;;  %v3037_v62 = vld [vmem:[#allocation8 + $0x1b8] sm:$0xf0] }
 0x102   :  { %1857 = vmatpush.bf16.msrb.mxu0 %v2129_v15  ;;  %1870 = vmatpush.bf16.msrb.mxu1 %v2353_v16  ;;  %v2217_v15 = vor.u32 %v3012_v3, %v2214_v4  ;;  %v2441_v16 = vor.u32 %v3068_v7, %v2438_v8  ;;  %v2528_v63 = vld [vmem:[#allocation8 + $0x360] sm:$0xf]  ;;  %v3093_v0 = vld [vmem:[#allocation8 + $0x378] sm:$0xf0]  ;;  %v3159_v3 = vld [vmem:[#allocation8 + $0x58c] sm:$0xf]  ;;  %v2305_v7 = vor.u32 %v3037_v62, %v2304_v61 }
 0x103   :  { %v2802_v4 = vld [vmem:[#allocation8 + $0x5a4] sm:$0xf0]  ;;  %v2529_v8 = vor.u32 %v3093_v0, %v2528_v63  ;;  %v2416_v63 = vld [vmem:[#allocation8 + $0x280] sm:$0xf]  ;;  %v3065_v0 = vld [vmem:[#allocation8 + $0x298] sm:$0xf0] }
 0x105   :  { %1882 = vmatpush.bf16.msrb.mxu2 %v2605_v20  ;;  %1895 = vmatpush.bf16.msrb.mxu3 %v2829_v21  ;;  %v2917_v20 = vor.u32 %v3187_v13, %v2914_v14  ;;  %v3061_v21 = vld [vmem:[#allocation8 + $0x27c] sm:$0xf]  ;;  %v2500_v13 = vld [vmem:[#allocation8 + $0x328] sm:$0xf] }
 0x106   :  { %1858 = vmatpush.bf16.msrb.mxu0 %v2101_v31  ;;  %1871 = vmatpush.bf16.msrb.mxu1 %v2325_v32  ;;  %v2413_v28 = vor.u32 %v3061_v21, %v2410_v22  ;;  %v2665_v31 = vor.u32 %v3124_v23, %v2662_v24  ;;  %v2889_v32 = vor.u32 %v3180_v25, %v2886_v26  ;;  %v2752_v21 = vld [vmem:[#allocation8 + $0x520] sm:$0xf]  ;;  %v3149_v22 = vld [vmem:[#allocation8 + $0x538] sm:$0xf0] }
 0x107   :  { %v2976_v23 = vld [vmem:[#allocation8 + $0x6e0] sm:$0xf]  ;;  %v3205_v24 = vld [vmem:[#allocation8 + $0x6f8] sm:$0xf0]  ;;  %v2277_v25 = vor.u32 %v3030_v12, %v2276_v9  ;;  %v2164_v12 = vld [vmem:[#allocation8 + $0x88] sm:$0xf] }
 0x109   :  { %1883 = vmatpush.bf16.msrb.mxu2 %v2577_v38  ;;  %1896 = vmatpush.bf16.msrb.mxu3 %v2801_v39  ;;  %v2858_v38 = vld [vmem:[#allocation8 + $0x614] sm:$0xf0]  ;;  %v2161_v39 = vor.u32 %v2998_v29, %v2158_v30  ;;  %v2248_v29 = vld [vmem:[#allocation8 + $0x130] sm:$0xf]  ;;  %v3023_v30 = vld [vmem:[#allocation8 + $0x148] sm:$0xf0] }
 0x10a   :  { %1903 = vmatpush.bf16.msra.mxu0 %v2301_v33  ;;  %1916 = vmatpush.bf16.msra.mxu1 %v2525_v34  ;;  %v3054_v33 = vld [vmem:[#allocation8 + $0x244] sm:$0xf]  ;;  %v2382_v34 = vld [vmem:[#allocation8 + $0x25c] sm:$0xf0]  ;;  %v2861_v44 = vor.u32 %v3173_v37, %v2858_v38  ;;  %v2948_v38 = vld [vmem:[#allocation8 + $0x6a8] sm:$0xf] }
 0x10b   :  { %1859 = vmatmul.bf16.vlgmr.msrb.gmra.mxu0 %v3445_v47  ;;  %1872 = vmatmul.bf16.vlgmr.msrb.gmra.mxu1 %v3447_v48  ;;  %v2385_v40 = vor.u32 %v3054_v33, %v2382_v34  ;;  %v2977_v33 = vor.u32 %v3205_v24, %v2976_v23  ;;  %v3079_v34 = vld [vmem:[#allocation8 + $0x308] sm:$0xf0]  ;;  %v3142_v37 = vld [vmem:[#allocation8 + $0x500] sm:$0xf0] }
 0x10d   :  { %1884 = vmatpush.bf16.msrb.mxu2 %v2549_v53  ;;  %1897 = vmatpush.bf16.msrb.mxu3 %v2773_v54  ;;  %v2133_v53 = vor.u32 %v2991_v41, %v2130_v42  ;;  %v2357_v54 = vor.u32 %v3047_v45, %v2354_v46  ;;  %v477_v42 = vperm.slane %v3475_v35, 0  ;;  %v2220_v45 = vld [vmem:[#allocation8 + $0xf8] sm:$0xf]  ;;  %v3016_v46 = vld [vmem:[#allocation8 + $0x110] sm:$0xf0] }
 0x10e   :  { %1904 = vmatpush.bf16.msra.mxu0 %v2273_v51  ;;  %1917 = vmatpush.bf16.msra.mxu1 %v2497_v52  ;;  %v3166_v51 = vld [vmem:[#allocation8 + $0x5c4] sm:$0xf]  ;;  %v2830_v52 = vld [vmem:[#allocation8 + $0x5dc] sm:$0xf0] }
 0x10f   :  { %v2833_v59 = vor.u32 %v3166_v51, %v2830_v52  ;;  %v2444_v51 = vld [vmem:[#allocation8 + $0x2b8] sm:$0xf]  ;;  %v3072_v52 = vld [vmem:[#allocation8 + $0x2d0] sm:$0xf0] }
 0x110   :  { %1885 = vmatmul.bf16.vlgmr.msrb.gmra.mxu2 %v3451_v10  ;;  %1898 = vmatmul.bf16.vlgmr.msrb.gmra.mxu3 %v3453_v11 }
 0x111   :  { %1929 = vmatpush.bf16.msra.mxu2 %v2749_v57  ;;  %1942 = vmatpush.bf16.msra.mxu3 %v2973_v58  ;;  %v3040_v57 = vld [vmem:[#allocation8 + $0x1d4] sm:$0xf]  ;;  %v2609_v58 = vor.u32 %v3110_v49, %v2606_v50  ;;  %v2725_v49 = vor.u32 %v3142_v37, %v2724_v36  ;;  %v3114_v36 = vld [vmem:[#allocation8 + $0x420] sm:$0xf0]  ;;  %v2836_v37 = vld [vmem:[#allocation8 + $0x5c8] sm:$0xf] }
 0x112   :  { %1905 = vmatpush.bf16.msra.mxu0 %v2245_v1  ;;  %1918 = vmatpush.bf16.msra.mxu1 %v2469_v2  ;;  %v3103_v1 = vld [vmem:[#allocation8 + $0x3cc] sm:$0xf]  ;;  %v2578_v2 = vld [vmem:[#allocation8 + $0x3e4] sm:$0xf0] }
 0x113   :  { %v2581_v14 = vor.u32 %v3103_v1, %v2578_v2  ;;  %v2668_v1 = vld [vmem:[#allocation8 + $0x478] sm:$0xf] }
 0x115   :  { %1930 = vmatpush.bf16.msra.mxu2 %v2721_v5  ;;  %1943 = vmatpush.bf16.msra.mxu3 %v2945_v6  ;;  %v2105_v5 = vor.u32 %v2984_v55, %v2102_v56  ;;  %v2329_v6 = vor.u32 %v3040_v57, %v2326_v60  ;;  %v2920_v55 = vld [vmem:[#allocation8 + $0x670] sm:$0xf]  ;;  %v3191_v56 = vld [vmem:[#allocation8 + $0x688] sm:$0xf0]  ;;  %v2221_v57 = vor.u32 %v3016_v46, %v2220_v45  ;;  %v3009_v60 = vld [vmem:[#allocation8 + $0xd8] sm:$0xf0] }
 0x116   :  { %1906 = vmatpush.bf16.msra.mxu0 %v2217_v15  ;;  %1919 = vmatpush.bf16.msra.mxu1 %v2441_v16  ;;  %v2805_v15 = vor.u32 %v3159_v3, %v2802_v4  ;;  %v3086_v16 = vld [vmem:[#allocation8 + $0x340] sm:$0xf0]  ;;  %v2921_v62 = vor.u32 %v3191_v56, %v2920_v55  ;;  %v3128_v3 = vld [vmem:[#allocation8 + $0x490] sm:$0xf0]  ;;  %v2892_v4 = vld [vmem:[#allocation8 + $0x638] sm:$0xf] }
 0x117   :  { %v2501_v26 = vor.u32 %v3086_v16, %v2500_v13  ;;  %v3002_v13 = vld [vmem:[#allocation8 + $0xa0] sm:$0xf0]  ;;  %v2388_v16 = vld [vmem:[#allocation8 + $0x248] sm:$0xf]  ;;  %v2808_v55 = vld [vmem:[#allocation8 + $0x590] sm:$0xf] }
 0x118   :  { %v2165_v23 = vor.u32 %v3002_v13, %v2164_v12  ;;  %v3163_v56 = vld [vmem:[#allocation8 + $0x5a8] sm:$0xf0] }
 0x119   :  { %1931 = vmatpush.bf16.msra.mxu2 %v2693_v19  ;;  %1944 = vmatpush.bf16.msra.mxu3 %v2917_v20  ;;  %v3152_v19 = vld [vmem:[#allocation8 + $0x554] sm:$0xf]  ;;  %v2774_v20 = vld [vmem:[#allocation8 + $0x56c] sm:$0xf0] }
 0x11a   :  { %1907 = vmatpush.bf16.msra.mxu0 %v2189_v27  ;;  %1920 = vmatpush.bf16.msra.mxu1 %v2413_v28  ;;  %v2553_v27 = vor.u32 %v3096_v17, %v2550_v18  ;;  %v2777_v28 = vor.u32 %v3152_v19, %v2774_v20  ;;  %v3058_v17 = vld [vmem:[#allocation8 + $0x260] sm:$0xf0]  ;;  %v2640_v18 = vld [vmem:[#allocation8 + $0x440] sm:$0xf]  ;;  %v3121_v20 = vld [vmem:[#allocation8 + $0x458] sm:$0xf0] }
 0x11b   :  { %v2389_v24 = vor.u32 %v3058_v17, %v2388_v16 }
 0x11d   :  { %1932 = vmatpush.bf16.msra.mxu2 %v2665_v31  ;;  %1945 = vmatpush.bf16.msra.mxu3 %v2889_v32  ;;  %v2472_v31 = vld [vmem:[#allocation8 + $0x2f0] sm:$0xf]  ;;  %v2753_v32 = vor.u32 %v3149_v22, %v2752_v21  ;;  %v2864_v21 = vld [vmem:[#allocation8 + $0x600] sm:$0xf]  ;;  %v3177_v22 = vld [vmem:[#allocation8 + $0x618] sm:$0xf0] }
 0x11e   :  { %1908 = vmatpush.bf16.msra.mxu0 %v2161_v39  ;;  %1921 = vmatpush.bf16.msra.mxu1 %v2385_v40  ;;  %v3198_v39 = vld [vmem:[#allocation8 + $0x6c0] sm:$0xf0]  ;;  %v2249_v40 = vor.u32 %v3023_v30, %v2248_v29  ;;  %v2473_v41 = vor.u32 %v3079_v34, %v2472_v31  ;;  %v2641_v29 = vor.u32 %v3121_v20, %v2640_v18  ;;  %v2360_v31 = vld [vmem:[#allocation8 + $0x210] sm:$0xf] }
 0x11f   :  { %v2949_v50 = vor.u32 %v3198_v39, %v2948_v38  ;;  %v2865_v30 = vor.u32 %v3177_v22, %v2864_v21  ;;  %v3170_v38 = vld [vmem:[#allocation8 + $0x5e0] sm:$0xf0] }
 0x121   :  { %1933 = vmatpush.bf16.msra.mxu2 %v2637_v43  ;;  %1946 = vmatpush.bf16.msra.mxu3 %v2861_v44 }
 0x122   :  { %1909 = vmatpush.bf16.msra.mxu0 %v2133_v53  ;;  %1922 = vmatpush.bf16.msra.mxu1 %v2357_v54  ;;  %v2696_v53 = vld [vmem:[#allocation8 + $0x4b0] sm:$0xf]  ;;  %v3135_v54 = vld [vmem:[#allocation8 + $0x4c8] sm:$0xf0] }
 0x123   :  { %v2697_v61 = vor.u32 %v3135_v54, %v2696_v53  ;;  %v3107_v53 = vld [vmem:[#allocation8 + $0x3e8] sm:$0xf0] }
 0x125   :  { %1934 = vmatpush.bf16.msra.mxu2 %v2609_v58  ;;  %1947 = vmatpush.bf16.msra.mxu3 %v2833_v59  ;;  %v1652_v43 = vpop.f32.mrf.mxu0  ;;  %v1665_v44 = vpop.f32.mrf.mxu1  ;;  %v2445_v58 = vor.u32 %v3072_v52, %v2444_v51  ;;  %v2192_v59 = vld [vmem:[#allocation8 + $0xc0] sm:$0xf]  ;;  %v3044_v51 = vld [vmem:[#allocation8 + $0x1f0] sm:$0xf0]  ;;  %v2584_v52 = vld [vmem:[#allocation8 + $0x3d0] sm:$0xf] }
 0x126   :  { %1910 = vmatpush.bf16.msra.mxu0 %v2105_v5  ;;  %1923 = vmatpush.bf16.msra.mxu1 %v2329_v6  ;;  %v1653_v2 = vadd.f32 %v1652_v43, %v477_v42  ;;  %v3184_v5 = vld [vmem:[#allocation8 + $0x650] sm:$0xf0]  ;;  %v2193_v6 = vor.u32 %v3009_v60, %v2192_v59  ;;  %v2108_v42 = vld [vmem:[#allocation8 + $0x18] sm:$0xf] }
 0x127   :  { %v2988_v43 = vld [vmem:[#allocation8 + $0x30] sm:$0xf0] }
 0x128   :  { %v1666_v19 = vadd.f32 %v1665_v44, %v1653_v2  ;;  %v2332_v44 = vld [vmem:[#allocation8 + $0x1d8] sm:$0xf] }
 0x129   :  { %1935 = vmatpush.bf16.msra.mxu2 %v2581_v14  ;;  %1948 = vmatpush.bf16.msra.mxu3 %v2805_v15  ;;  %v2669_v14 = vor.u32 %v3128_v3, %v2668_v1  ;;  %v2893_v15 = vor.u32 %v3184_v5, %v2892_v4  ;;  %v2333_v59 = vor.u32 %v3044_v51, %v2332_v44  ;;  %v3100_v1 = vld [vmem:[#allocation8 + $0x3b0] sm:$0xf0]  ;;  %v2780_v2 = vld [vmem:[#allocation8 + $0x558] sm:$0xf] }
 0x12a   :  { %1955 = vmatpush.bf16.msrb.mxu0 %v2305_v7  ;;  %1968 = vmatpush.bf16.msrb.mxu1 %v2529_v8  ;;  %v2417_v7 = vor.u32 %v3065_v0, %v2416_v63  ;;  %v2809_v63 = vor.u32 %v3163_v56, %v2808_v55  ;;  %v2556_v0 = vld [vmem:[#allocation8 + $0x398] sm:$0xf]  ;;  %v3156_v3 = vld [vmem:[#allocation8 + $0x570] sm:$0xf0] }
 0x12b   :  { %1911 = vmatmul.bf16.vlgmr.msra.gmra.mxu0 %v3445_v47  ;;  %1924 = vmatmul.bf16.vlgmr.msra.gmra.mxu1 %v3447_v48 }
 0x12d   :  { %1936 = vmatpush.bf16.msra.mxu2 %v2553_v27  ;;  %1949 = vmatpush.bf16.msra.mxu3 %v2777_v28  ;;  %v1654_v8 = vpop.f32.mrf.mxu0  ;;  %v1667_v9 = vpop.f32.mrf.mxu1 }
 0x12e   :  { %1956 = vmatpush.bf16.msrb.mxu0 %v2277_v25  ;;  %1969 = vmatpush.bf16.msrb.mxu1 %v2501_v26  ;;  %v2136_v25 = vld [vmem:[#allocation8 + $0x50] sm:$0xf]  ;;  %v2995_v26 = vld [vmem:[#allocation8 + $0x68] sm:$0xf0]  ;;  %v2781_v8 = vor.u32 %v3156_v3, %v2780_v2 }
 0x130   :  { %1937 = vmatmul.bf16.vlgmr.msra.gmra.mxu2 %v3451_v10  ;;  %1950 = vmatmul.bf16.vlgmr.msra.gmra.mxu3 %v3453_v11 }
 0x131   :  { %1981 = vmatpush.bf16.msrb.mxu2 %v2753_v32  ;;  %1994 = vmatpush.bf16.msrb.mxu3 %v2977_v33  ;;  %v3051_v32 = vld [vmem:[#allocation8 + $0x228] sm:$0xf0]  ;;  %v2612_v33 = vld [vmem:[#allocation8 + $0x408] sm:$0xf] }
 0x132   :  { %1957 = vmatpush.bf16.msrb.mxu0 %v2249_v40  ;;  %1970 = vmatpush.bf16.msrb.mxu1 %v2473_v41  ;;  %v2137_v40 = vor.u32 %v2995_v26, %v2136_v25  ;;  %v2361_v41 = vor.u32 %v3051_v32, %v2360_v31 }
 0x133   :  { %v1678_v27 = vpop.f32.mrf.mxu2  ;;  %v1691_v28 = vpop.f32.mrf.mxu3 }
 0x134   :  { %v1679_v34 = vadd.f32 %v1678_v27, %v1666_v19 }
 0x135   :  { %1982 = vmatpush.bf16.msrb.mxu2 %v2725_v49  ;;  %1995 = vmatpush.bf16.msrb.mxu3 %v2949_v50  ;;  %v1704_v45 = vpop.f32.mrf.mxu0  ;;  %v1717_v46 = vpop.f32.mrf.mxu1  ;;  %v2613_v49 = vor.u32 %v3114_v36, %v2612_v33  ;;  %v2837_v50 = vor.u32 %v3170_v38, %v2836_v37 }
 0x136   :  { %1958 = vmatpush.bf16.msrb.mxu0 %v2221_v57  ;;  %1971 = vmatpush.bf16.msrb.mxu1 %v2445_v58  ;;  %v1692_v39 = vadd.f32 %v1691_v28, %v1679_v34  ;;  %v478_v57 = vperm.slane %v3475_v35, 1  ;;  %v2109_v58 = vor.u32 %v2988_v43, %v2108_v42 }
 0x138   :  { %v2007_v54 = vmul.f32 0.5, %v1692_v39  ;;  %v1705_v4 = vadd.f32 %v1704_v45, %v478_v57 }
 0x139   :  { %1983 = vmatpush.bf16.msrb.mxu2 %v2697_v61  ;;  %1996 = vmatpush.bf16.msrb.mxu3 %v2921_v62  ;;  %v2585_v62 = vor.u32 %v3107_v53, %v2584_v52 }
 0x13a   :  { %1959 = vmatpush.bf16.msrb.mxu0 %v2193_v6  ;;  %1972 = vmatpush.bf16.msrb.mxu1 %v2417_v7  ;;  %3216 = vtanh.f32 %v2007_v54  ;;  %v2557_v7 = vor.u32 %v3100_v1, %v2556_v0  ;;  %v1718_v13 = vadd.f32 %v1717_v46, %v1705_v4 }
 0x13b   :  { %v1680_v60 = vpop.f32.mrf.mxu2  ;;  %v1693_v61 = vpop.f32.mrf.mxu3 }
 0x13c   :  { %v481_v60 = vperm.slane %v3475_v35, 4 }
 0x13d   :  { %1984 = vmatpush.bf16.msrb.mxu2 %v2669_v14  ;;  %1997 = vmatpush.bf16.msrb.mxu3 %v2893_v15  ;;  %v1706_v5 = vpop.f32.mrf.mxu0  ;;  %v1719_v6 = vpop.f32.mrf.mxu1 }
 0x13e   :  { %1960 = vmatpush.bf16.msrb.mxu0 %v2165_v23  ;;  %1973 = vmatpush.bf16.msrb.mxu1 %v2389_v24 }
 0x140   :  { %v3217_v9 = vpop.eup %3216 }
 0x141   :  { %1985 = vmatpush.bf16.msrb.mxu2 %v2641_v29  ;;  %1998 = vmatpush.bf16.msrb.mxu3 %v2865_v30  ;;  %v2021_v12 = vadd.f32 1.0, %v3217_v9 }
 0x142   :  { %1961 = vmatpush.bf16.msrb.mxu0 %v2137_v40  ;;  %1974 = vmatpush.bf16.msrb.mxu1 %v2361_v41  ;;  %v480_v41 = vperm.slane %v3475_v35, 3 }
 0x143   :  { %v2028_v14 = vmul.f32 0.5, %v2021_v12  ;;  %v1730_v15 = vpop.f32.mrf.mxu2  ;;  %v1743_v16 = vpop.f32.mrf.mxu3 }
 0x144   :  { %v1731_v17 = vadd.f32 %v1730_v15, %v1718_v13  ;;  %v482_v15 = vperm.slane %v3475_v35, 5 }
 0x145   :  { %1986 = vmatpush.bf16.msrb.mxu2 %v2613_v49  ;;  %1999 = vmatpush.bf16.msrb.mxu3 %v2837_v50  ;;  %2035 = vst [vmem:[#allocation11] sm:$0xff] %v2028_v14 }
 0x146   :  { %1962 = vmatpush.bf16.msrb.mxu0 %v2109_v58  ;;  %1975 = vmatpush.bf16.msrb.mxu1 %v2333_v59  ;;  %v1744_v18 = vadd.f32 %v1743_v16, %v1731_v17 }
 0x148   :  { %v1756_v19 = vpop.f32.mrf.mxu0  ;;  %v1769_v20 = vpop.f32.mrf.mxu1  ;;  %v2008_v21 = vmul.f32 0.5, %v1744_v18 }
 0x149   :  { %1987 = vmatpush.bf16.msrb.mxu2 %v2585_v62  ;;  %2000 = vmatpush.bf16.msrb.mxu3 %v2809_v63 }
 0x14a   :  { %1963 = vmatmul.bf16.vlgmr.msrb.gmra.mxu0 %v3445_v47  ;;  %1976 = vmatmul.bf16.vlgmr.msrb.gmra.mxu1 %v3447_v48  ;;  %3218 = vtanh.f32 %v2008_v21  ;;  %v479_v47 = vperm.slane %v3475_v35, 2 }
 0x14b   :  { %v1732_v48 = vpop.f32.mrf.mxu2  ;;  %v1745_v22 = vpop.f32.mrf.mxu3 }
 0x14c   :  { %v1757_v23 = vadd.f32 %v1756_v19, %v479_v47 }
 0x14d   :  { %1988 = vmatpush.bf16.msrb.mxu2 %v2557_v7  ;;  %2001 = vmatpush.bf16.msrb.mxu3 %v2781_v8 }
 0x14e   :  { %v1770_v29 = vadd.f32 %v1769_v20, %v1757_v23 }
 0x150   :  { %1989 = vmatmul.bf16.vlgmr.msrb.gmra.mxu2 %v3451_v10  ;;  %2002 = vmatmul.bf16.vlgmr.msrb.gmra.mxu3 %v3453_v11  ;;  %v1758_v24 = vpop.f32.mrf.mxu0  ;;  %v1771_v25 = vpop.f32.mrf.mxu1 }
 0x151   :  { %v3219_v26 = vpop.eup %3218 }
 0x152   :  { %v2022_v27 = vadd.f32 1.0, %v3219_v26 }
 0x153   :  { %v1782_v30 = vpop.f32.mrf.mxu2  ;;  %v1795_v31 = vpop.f32.mrf.mxu3 }
 0x154   :  { %v2029_v28 = vmul.f32 0.5, %v2022_v27  ;;  %v1783_v10 = vadd.f32 %v1782_v30, %v1770_v29  ;;  %v483_v30 = vperm.slane %v3475_v35, 6 }
 0x156   :  { %2036 = vst [vmem:[#allocation11 + $0x8] sm:$0xff] %v2029_v28  ;;  %v1796_v11 = vadd.f32 %v1795_v31, %v1783_v10 }
 0x158   :  { %v2009_v32 = vmul.f32 0.5, %v1796_v11 }
 0x15a   :  { %3220 = vtanh.f32 %v2009_v32 }
 0x15b   :  { %v1784_v33 = vpop.f32.mrf.mxu2  ;;  %v1797_v34 = vpop.f32.mrf.mxu3 }
 0x160   :  { %v3221_v36 = vpop.eup %3220 }
 0x161   :  { %v2023_v37 = vadd.f32 1.0, %v3221_v36 }
 0x163   :  { %v2030_v38 = vmul.f32 0.5, %v2023_v37 }
 0x165   :  { %2037 = vst [vmem:[#allocation11 + $0x10] sm:$0xff] %v2030_v38 }
 0x168   :  { %v1808_v39 = vpop.f32.mrf.mxu0  ;;  %v1821_v40 = vpop.f32.mrf.mxu1 }
 0x169   :  { %v1809_v42 = vadd.f32 %v1808_v39, %v480_v41 }
 0x16b   :  { %v1822_v45 = vadd.f32 %v1821_v40, %v1809_v42 }
 0x170   :  { %v1810_v43 = vpop.f32.mrf.mxu0  ;;  %v1823_v44 = vpop.f32.mrf.mxu1 }
 0x173   :  { %v1834_v46 = vpop.f32.mrf.mxu2  ;;  %v1847_v49 = vpop.f32.mrf.mxu3 }
 0x174   :  { %v1835_v50 = vadd.f32 %v1834_v46, %v1822_v45 }
 0x176   :  { %v1848_v51 = vadd.f32 %v1847_v49, %v1835_v50 }
 0x178   :  { %v2010_v52 = vmul.f32 0.5, %v1848_v51 }
 0x17a   :  { %3222 = vtanh.f32 %v2010_v52 }
 0x17b   :  { %v1836_v53 = vpop.f32.mrf.mxu2  ;;  %v1849_v54 = vpop.f32.mrf.mxu3 }
 0x180   :  { %v3223_v55 = vpop.eup %3222 }
 0x181   :  { %v2024_v56 = vadd.f32 1.0, %v3223_v55 }
 0x183   :  { %v2031_v57 = vmul.f32 0.5, %v2024_v56 }
 0x185   :  { %2038 = vst [vmem:[#allocation11 + $0x18] sm:$0xff] %v2031_v57 }
 0x188   :  { %v1860_v58 = vpop.f32.mrf.mxu0  ;;  %v1873_v59 = vpop.f32.mrf.mxu1 }
 0x189   :  { %v1861_v61 = vadd.f32 %v1860_v58, %v481_v60 }
 0x18b   :  { %v1874_v0 = vadd.f32 %v1873_v59, %v1861_v61 }
 0x190   :  { %v1862_v62 = vpop.f32.mrf.mxu0  ;;  %v1875_v63 = vpop.f32.mrf.mxu1 }
 0x193   :  { %v1886_v1 = vpop.f32.mrf.mxu2  ;;  %v1899_v2 = vpop.f32.mrf.mxu3 }
 0x194   :  { %v1887_v3 = vadd.f32 %v1886_v1, %v1874_v0 }
 0x196   :  { %v1900_v4 = vadd.f32 %v1899_v2, %v1887_v3 }
 0x198   :  { %v2011_v5 = vmul.f32 0.5, %v1900_v4 }
 0x19a   :  { %3224 = vtanh.f32 %v2011_v5 }
 0x19b   :  { %v1888_v6 = vpop.f32.mrf.mxu2  ;;  %v1901_v7 = vpop.f32.mrf.mxu3 }
 0x1a0   :  { %v3225_v8 = vpop.eup %3224 }
 0x1a1   :  { %v2025_v9 = vadd.f32 1.0, %v3225_v8 }
 0x1a3   :  { %v2032_v12 = vmul.f32 0.5, %v2025_v9 }
 0x1a5   :  { %2039 = vst [vmem:[#allocation11 + $0x20] sm:$0xff] %v2032_v12 }
 0x1a8   :  { %v1912_v13 = vpop.f32.mrf.mxu0  ;;  %v1925_v14 = vpop.f32.mrf.mxu1 }
 0x1a9   :  { %v1913_v16 = vadd.f32 %v1912_v13, %v482_v15 }
 0x1ab   :  { %v1926_v19 = vadd.f32 %v1925_v14, %v1913_v16 }
 0x1b0   :  { %v1914_v17 = vpop.f32.mrf.mxu0  ;;  %v1927_v18 = vpop.f32.mrf.mxu1 }
 0x1b3   :  { %v1938_v20 = vpop.f32.mrf.mxu2  ;;  %v1951_v21 = vpop.f32.mrf.mxu3 }
 0x1b4   :  { %v1939_v47 = vadd.f32 %v1938_v20, %v1926_v19 }
 0x1b6   :  { %v1952_v48 = vadd.f32 %v1951_v21, %v1939_v47 }
 0x1b8   :  { %v2012_v22 = vmul.f32 0.5, %v1952_v48 }
 0x1ba   :  { %3226 = vtanh.f32 %v2012_v22 }
 0x1bb   :  { %v1940_v23 = vpop.f32.mrf.mxu2  ;;  %v1953_v24 = vpop.f32.mrf.mxu3 }
 0x1c0   :  { %v3227_v25 = vpop.eup %3226 }
 0x1c1   :  { %v2026_v26 = vadd.f32 1.0, %v3227_v25 }
 0x1c3   :  { %v2033_v27 = vmul.f32 0.5, %v2026_v26 }
 0x1c5   :  { %2040 = vst [vmem:[#allocation11 + $0x28] sm:$0xff] %v2033_v27 }
 0x1c7   :  { %v1964_v28 = vpop.f32.mrf.mxu0  ;;  %v1977_v29 = vpop.f32.mrf.mxu1 }
 0x1c8   :  { %v1965_v31 = vadd.f32 %v1964_v28, %v483_v30 }
 0x1ca   :  { %v1978_v32 = vadd.f32 %v1977_v29, %v1965_v31 }
 0x1cf   :  { %v1966_v10 = vpop.f32.mrf.mxu0  ;;  %v1979_v11 = vpop.f32.mrf.mxu1 }
 0x1d3   :  { %v1990_v33 = vpop.f32.mrf.mxu2  ;;  %v2003_v34 = vpop.f32.mrf.mxu3 }
 0x1d4   :  { %v1991_v36 = vadd.f32 %v1990_v33, %v1978_v32 }
 0x1d6   :  { %v2004_v37 = vadd.f32 %v2003_v34, %v1991_v36 }
 0x1d8   :  { %v2013_v38 = vmul.f32 0.5, %v2004_v37 }
 0x1da   :  { %3228 = vtanh.f32 %v2013_v38 }
 0x1db   :  { %v1992_v39 = vpop.f32.mrf.mxu2  ;;  %v2005_v40 = vpop.f32.mrf.mxu3 }
 0x1e0   :  { %v3229_v41 = vpop.eup %3228 }
 0x1e1   :  { %v2027_v35 = vadd.f32 1.0, %v3229_v41 }
 0x1e3   :  { %v2034_v42 = vmul.f32 0.5, %v2027_v35 }
 0x1e5   :  { %2042 = vst.msk [vmem:[#allocation11 + $0x30] sm:$0xff] %vm2041_vm2, %v2034_v42 }
 0x1e6   :  { %2053 = dma.vmem_to_hbm [thread:$0]  %s2049_s4, 896, %s2051_s21, [#allocation4]  }
 0x1e7   :  { %3380 = dma.done.wait [#allocation4], 896  }
 0x1e8   :  { %3381 = vsyncadd [#allocation4], 4294966400 }
 0x1e9   :  { %2058 = vsyncpa [#allocation3], 1 }
 0x1ea   :  { %2059 = vsyncpa [#allocation6], 1 }
 0x1eb   :  { %2060 = vsyncpa [#allocation9], 1 }
 0x1ec   :  { %2061 = vsyncpa [#allocation4], 1 }

</bundles_post_ra>
